<compile_context>
chip_gen: v7x
topology: tpu7x:2x2x1
jax: 0.10.0
libtpu: 0.0.40
codegen_flags: <defaults>
</compile_context>

<pallas_src>
import math

import jax
import jax.numpy as jnp
from jax import lax
from jax.experimental import pallas as pl
from jax.experimental.pallas import tpu as pltpu


def _make_fused_lstm_kernel(num_layers, S, B, H):
    """Build a kernel that runs all layers and all timesteps in one invocation.

    Ref order: x, (w_ihT, w_hhT, b) * num_layers, out, y_scratch, gx_scratch.
      x_ref    : (S, B, D_in)  full sequence, seq-major, fp32
      w_ihT    : (D_l, 4H)     pre-transposed input->hidden weights
      w_hhT    : (H, 4H)       pre-transposed hidden->hidden weights
      b        : (1, 4H)       b_ih + b_hh (pre-summed)
      out_ref  : (S, B, H)     h_t for every timestep of the last layer
      y_scr    : (S, B, H)     inter-layer activations (VMEM)
      gx_scr   : (S, B, 4H)    hoisted input projection for the current layer
    """
    H4 = 4 * H

    def kernel(*refs):
        x_ref = refs[0]
        layer_refs = refs[1:1 + 3 * num_layers]
        out_ref = refs[1 + 3 * num_layers]
        y_scr = refs[2 + 3 * num_layers]
        gx_scr = refs[3 + 3 * num_layers]

        cur = x_ref[...].astype(jnp.float32)                    # (S, B, D_in)

        for layer in range(num_layers):
            wihT_ref, whhT_ref, b_ref = layer_refs[3 * layer:3 * layer + 3]
            wihT = wihT_ref[...]                                 # (D_l, 4H)
            whhT = whhT_ref[...]                                 # (H, 4H)
            bias = b_ref[...]                                    # (1, 4H)
            d_l = wihT.shape[0]

            # Hoisted input projection: one matmul for the whole sequence.
            gx = jnp.dot(cur.reshape(S * B, d_l), wihT,
                         preferred_element_type=jnp.float32) + bias
            gx_scr[...] = gx.reshape(S, B, H4)

            is_last = layer == num_layers - 1
            dst = out_ref if is_last else y_scr

            def step(t, carry):
                h, c = carry
                # Only the recurrent matmul stays on the serial path.
                gates = gx_scr[t] + jnp.dot(
                    h, whhT, preferred_element_type=jnp.float32)  # (B, 4H)
                i_g = jax.nn.sigmoid(gates[:, 0 * H:1 * H])
                f_g = jax.nn.sigmoid(gates[:, 1 * H:2 * H])
                g_g = jnp.tanh(gates[:, 2 * H:3 * H])
                o_g = jax.nn.sigmoid(gates[:, 3 * H:4 * H])
                c_t = f_g * c + i_g * g_g
                h_t = o_g * jnp.tanh(c_t)
                dst[t] = h_t.astype(dst.dtype)
                return (h_t, c_t)

            carry0 = (jnp.zeros((B, H), jnp.float32),
                      jnp.zeros((B, H), jnp.float32))
            lax.fori_loop(0, S, step, carry0, unroll=True)

            if not is_last:
                cur = y_scr[...]

    return kernel


def lstm_encoder_forward(x_bsd, params):
    """Equivalent of LSTMEncoder.forward: x [B, SEQ, D_in] -> [B, SEQ, H]."""
    B0, S, _ = x_bsd.shape
    num_layers = len(params)
    H = params[0][1].shape[1]            # w_hh: (4H, H)

    # Seq-major layout + pad batch to a sublane group (multiple of 8).
    B = max(8, ((B0 + 7) // 8) * 8)
    x = jnp.transpose(x_bsd, (1, 0, 2)).astype(jnp.float32)      # (S, B0, D)
    if B != B0:
        x = jnp.pad(x, ((0, 0), (0, B - B0), (0, 0)))

    vmem_spec = pl.BlockSpec(memory_space=pltpu.MemorySpace.VMEM)

    kernel_args = [x]
    in_specs = [vmem_spec]
    for (w_ih, w_hh, b_ih, b_hh) in params:
        w_ihT = jnp.asarray(w_ih, jnp.float32).T                 # (D_l, 4H)
        w_hhT = jnp.asarray(w_hh, jnp.float32).T                 # (H, 4H)
        b = (jnp.asarray(b_ih, jnp.float32)
             + jnp.asarray(b_hh, jnp.float32)).reshape(1, 4 * H)  # (1, 4H)
        kernel_args += [w_ihT, w_hhT, b]
        in_specs += [vmem_spec, vmem_spec, vmem_spec]

    kernel = _make_fused_lstm_kernel(num_layers, S, B, H)

    out = pl.pallas_call(
        kernel,
        out_shape=jax.ShapeDtypeStruct((S, B, H), jnp.float32),
        in_specs=in_specs,
        out_specs=vmem_spec,
        scratch_shapes=[
            pltpu.VMEM((S, B, H), jnp.float32),       # inter-layer activations
            pltpu.VMEM((S, B, 4 * H), jnp.float32),   # hoisted input projection
        ],
    )(*kernel_args)

    out = out[:, :B0, :]                                        # drop batch pad
    return jnp.transpose(out, (1, 0, 2))                        # (B0, S, H)


def init_lstm_params(key, input_dim, hidden_dim, num_layers):
    """PyTorch-style uniform(-1/sqrt(H), 1/sqrt(H)) init, deterministic."""
    params = []
    bound = 1.0 / math.sqrt(hidden_dim)
    for layer in range(num_layers):
        d_in = input_dim if layer == 0 else hidden_dim
        key, k1, k2, k3, k4 = jax.random.split(key, 5)
        w_ih = jax.random.uniform(k1, (4 * hidden_dim, d_in),
                                  jnp.float32, -bound, bound)
        w_hh = jax.random.uniform(k2, (4 * hidden_dim, hidden_dim),
                                  jnp.float32, -bound, bound)
        b_ih = jax.random.uniform(k3, (4 * hidden_dim,),
                                  jnp.float32, -bound, bound)
        b_hh = jax.random.uniform(k4, (4 * hidden_dim,),
                                  jnp.float32, -bound, bound)
        params.append((w_ih, w_hh, b_ih, b_hh))
    return params


def _reference_lstm(x_bsd, params):
    """Pure-JAX reference (lax.scan), PyTorch LSTM gate ordering i,f,g,o."""
    x = jnp.transpose(x_bsd, (1, 0, 2)).astype(jnp.float32)
    B = x.shape[1]
    for (w_ih, w_hh, b_ih, b_hh) in params:
        H = w_hh.shape[1]

        def step(carry, x_t):
            h, c = carry
            g = x_t @ w_ih.T + h @ w_hh.T + b_ih + b_hh
            i = jax.nn.sigmoid(g[:, 0 * H:1 * H])
            f = jax.nn.sigmoid(g[:, 1 * H:2 * H])
            gg = jnp.tanh(g[:, 2 * H:3 * H])
            o = jax.nn.sigmoid(g[:, 3 * H:4 * H])
            c = f * c + i * gg
            h = o * jnp.tanh(c)
            return (h, c), h

        init = (jnp.zeros((B, H), jnp.float32), jnp.zeros((B, H), jnp.float32))
        _, x = jax.lax.scan(step, init, x)
    return jnp.transpose(x, (1, 0, 2))


if __name__ == "__main__":
    # args.video_models.lstm: input_dim=16, hidden_dim=32, layers=2
    B, SEQ, INPUT_DIM, HIDDEN_DIM, LAYERS = 2, 8, 16, 32, 2

    key = jax.random.PRNGKey(0)
    kx, kp = jax.random.split(key)
    x = jax.random.normal(kx, (B, SEQ, INPUT_DIM), dtype=jnp.float32)
    params = init_lstm_params(kp, INPUT_DIM, HIDDEN_DIM, LAYERS)

    out = jax.block_until_ready(lstm_encoder_forward(x, params))
    assert out.shape == (B, SEQ, HIDDEN_DIM), out.shape

    ref = jax.block_until_ready(_reference_lstm(x, params))
    assert jnp.allclose(out, ref, atol=1e-4, rtol=1e-4), (
        float(jnp.max(jnp.abs(out - ref))))

    print("KERNEL_OK")
</pallas_src>

<mosaic_0001>
module attributes {stable_mosaic.version = 11 : i64} {
  func.func @kernel(%arg0: memref<8x8x16xf32, #tpu.memory_space<vmem>>, %arg1: memref<16x128xf32, #tpu.memory_space<vmem>>, %arg2: memref<32x128xf32, #tpu.memory_space<vmem>>, %arg3: memref<1x128xf32, #tpu.memory_space<vmem>>, %arg4: memref<32x128xf32, #tpu.memory_space<vmem>>, %arg5: memref<32x128xf32, #tpu.memory_space<vmem>>, %arg6: memref<1x128xf32, #tpu.memory_space<vmem>>, %arg7: memref<8x8x32xf32, #tpu.memory_space<vmem>>, %arg8: memref<8x8x32xf32, #tpu.memory_space<vmem>>, %arg9: memref<8x8x128xf32, #tpu.memory_space<vmem>>) attributes {dimension_semantics = [], scalar_prefetch = 0 : i64, scratch_operands = 2 : i64, tpu.core_type = #tpu.core_type<tc>} {
    %c0 = arith.constant 0 : index
    %c0_0 = arith.constant 0 : index
    %c0_1 = arith.constant 0 : index
    %0 = vector.load %arg0[%c0, %c0_0, %c0_1] : memref<8x8x16xf32, #tpu.memory_space<vmem>>, vector<8x8x16xf32>
    %c0_2 = arith.constant 0 : index
    %c0_3 = arith.constant 0 : index
    %1 = vector.load %arg1[%c0_2, %c0_3] : memref<16x128xf32, #tpu.memory_space<vmem>>, vector<16x128xf32>
    %c0_4 = arith.constant 0 : index
    %c0_5 = arith.constant 0 : index
    %2 = vector.load %arg2[%c0_4, %c0_5] : memref<32x128xf32, #tpu.memory_space<vmem>>, vector<32x128xf32>
    %c0_6 = arith.constant 0 : index
    %c0_7 = arith.constant 0 : index
    %3 = vector.load %arg3[%c0_6, %c0_7] : memref<1x128xf32, #tpu.memory_space<vmem>>, vector<1x128xf32>
    %4 = vector.shape_cast %0 : vector<8x8x16xf32> to vector<64x16xf32>
    %cst = arith.constant dense<0.000000e+00> : vector<64x128xf32>
    %5 = tpu.matmul %4, %1, %cst {dimension_numbers = #tpu.dot_dimension_numbers<[1], [0], [0], [1], [0, 0, 1, 1], [], []>} : vector<64x16xf32>, vector<16x128xf32>, vector<64x128xf32> -> vector<64x128xf32>
    %6 = vector.broadcast %3 : vector<1x128xf32> to vector<64x128xf32>
    %7 = arith.addf %5, %6 : vector<64x128xf32>
    %8 = vector.shape_cast %7 : vector<64x128xf32> to vector<8x8x128xf32>
    %c0_8 = arith.constant 0 : index
    %c0_9 = arith.constant 0 : index
    %c0_10 = arith.constant 0 : index
    %9 = vector.load %arg9[%c0_8, %c0_9, %c0_10] : memref<8x8x128xf32, #tpu.memory_space<vmem>>, vector<8x8x128xf32>
    tpu.vector_store %arg9[%c0_8, %c0_9, %c0_10], %8 {strides = array<i32>} : memref<8x8x128xf32, #tpu.memory_space<vmem>>, vector<8x8x128xf32>,
    %cst_11 = arith.constant 0.000000e+00 : f32
    %10 = vector.broadcast %cst_11 : f32 to vector<8x32xf32>
    %cst_12 = arith.constant 0.000000e+00 : f32
    %11 = vector.broadcast %cst_12 : f32 to vector<8x32xf32>
    %c0_i32 = arith.constant 0 : i32
    %12 = arith.index_cast %c0_i32 : i32 to index
    %c0_13 = arith.constant 0 : index
    %c0_14 = arith.constant 0 : index
    %13 = vector.load %arg9[%12, %c0_13, %c0_14] : memref<8x8x128xf32, #tpu.memory_space<vmem>>, vector<1x8x128xf32>
    %14 = vector.shape_cast %13 : vector<1x8x128xf32> to vector<8x128xf32>
    %cst_15 = arith.constant dense<0.000000e+00> : vector<8x128xf32>
    %15 = tpu.matmul %10, %2, %cst_15 {dimension_numbers = #tpu.dot_dimension_numbers<[1], [0], [0], [1], [0, 0, 1, 1], [], []>} : vector<8x32xf32>, vector<32x128xf32>, vector<8x128xf32> -> vector<8x128xf32>
    %16 = arith.addf %14, %15 : vector<8x128xf32>
    %17 = vector.extract_strided_slice %16 {offsets = [0, 0], sizes = [8, 32], strides = [1, 1]} : vector<8x128xf32> to vector<8x32xf32>
    %18 = arith.negf %17 : vector<8x32xf32>
    %19 = math.exp %18 : vector<8x32xf32>
    %cst_16 = arith.constant 1.000000e+00 : f32
    %20 = vector.broadcast %cst_16 : f32 to vector<8x32xf32>
    %21 = arith.addf %20, %19 : vector<8x32xf32>
    %22 = arith.divf %20, %21 : vector<8x32xf32>
    %23 = vector.extract_strided_slice %16 {offsets = [0, 32], sizes = [8, 32], strides = [1, 1]} : vector<8x128xf32> to vector<8x32xf32>
    %24 = arith.negf %23 : vector<8x32xf32>
    %25 = math.exp %24 : vector<8x32xf32>
    %cst_17 = arith.constant 1.000000e+00 : f32
    %26 = vector.broadcast %cst_17 : f32 to vector<8x32xf32>
    %27 = arith.addf %26, %25 : vector<8x32xf32>
    %28 = arith.divf %26, %27 : vector<8x32xf32>
    %29 = vector.extract_strided_slice %16 {offsets = [0, 64], sizes = [8, 32], strides = [1, 1]} : vector<8x128xf32> to vector<8x32xf32>
    %30 = math.tanh %29 : vector<8x32xf32>
    %31 = vector.extract_strided_slice %16 {offsets = [0, 96], sizes = [8, 32], strides = [1, 1]} : vector<8x128xf32> to vector<8x32xf32>
    %32 = arith.negf %31 : vector<8x32xf32>
    %33 = math.exp %32 : vector<8x32xf32>
    %cst_18 = arith.constant 1.000000e+00 : f32
    %34 = vector.broadcast %cst_18 : f32 to vector<8x32xf32>
    %35 = arith.addf %34, %33 : vector<8x32xf32>
    %36 = arith.divf %34, %35 : vector<8x32xf32>
    %37 = arith.mulf %28, %11 : vector<8x32xf32>
    %38 = arith.mulf %22, %30 : vector<8x32xf32>
    %39 = arith.addf %37, %38 : vector<8x32xf32>
    %40 = math.tanh %39 : vector<8x32xf32>
    %41 = arith.mulf %36, %40 : vector<8x32xf32>
    %42 = arith.index_cast %c0_i32 : i32 to index
    %c0_19 = arith.constant 0 : index
    %c0_20 = arith.constant 0 : index
    %43 = vector.load %arg8[%42, %c0_19, %c0_20] : memref<8x8x32xf32, #tpu.memory_space<vmem>>, vector<1x8x32xf32>
    %44 = vector.shape_cast %43 : vector<1x8x32xf32> to vector<8x32xf32>
    %45 = vector.shape_cast %41 : vector<8x32xf32> to vector<1x8x32xf32>
    tpu.vector_store %arg8[%42, %c0_19, %c0_20], %45 {strides = array<i32>} : memref<8x8x32xf32, #tpu.memory_space<vmem>>, vector<1x8x32xf32>,
    %c1_i32 = arith.constant 1 : i32
    %46 = arith.index_cast %c1_i32 : i32 to index
    %c0_21 = arith.constant 0 : index
    %c0_22 = arith.constant 0 : index
    %47 = vector.load %arg9[%46, %c0_21, %c0_22] : memref<8x8x128xf32, #tpu.memory_space<vmem>>, vector<1x8x128xf32>
    %48 = vector.shape_cast %47 : vector<1x8x128xf32> to vector<8x128xf32>
    %cst_23 = arith.constant dense<0.000000e+00> : vector<8x128xf32>
    %49 = tpu.matmul %41, %2, %cst_23 {dimension_numbers = #tpu.dot_dimension_numbers<[1], [0], [0], [1], [0, 0, 1, 1], [], []>} : vector<8x32xf32>, vector<32x128xf32>, vector<8x128xf32> -> vector<8x128xf32>
    %50 = arith.addf %48, %49 : vector<8x128xf32>
    %51 = vector.extract_strided_slice %50 {offsets = [0, 0], sizes = [8, 32], strides = [1, 1]} : vector<8x128xf32> to vector<8x32xf32>
    %52 = arith.negf %51 : vector<8x32xf32>
    %53 = math.exp %52 : vector<8x32xf32>
    %cst_24 = arith.constant 1.000000e+00 : f32
    %54 = vector.broadcast %cst_24 : f32 to vector<8x32xf32>
    %55 = arith.addf %54, %53 : vector<8x32xf32>
    %56 = arith.divf %54, %55 : vector<8x32xf32>
    %57 = vector.extract_strided_slice %50 {offsets = [0, 32], sizes = [8, 32], strides = [1, 1]} : vector<8x128xf32> to vector<8x32xf32>
    %58 = arith.negf %57 : vector<8x32xf32>
    %59 = math.exp %58 : vector<8x32xf32>
    %cst_25 = arith.constant 1.000000e+00 : f32
    %60 = vector.broadcast %cst_25 : f32 to vector<8x32xf32>
    %61 = arith.addf %60, %59 : vector<8x32xf32>
    %62 = arith.divf %60, %61 : vector<8x32xf32>
    %63 = vector.extract_strided_slice %50 {offsets = [0, 64], sizes = [8, 32], strides = [1, 1]} : vector<8x128xf32> to vector<8x32xf32>
    %64 = math.tanh %63 : vector<8x32xf32>
    %65 = vector.extract_strided_slice %50 {offsets = [0, 96], sizes = [8, 32], strides = [1, 1]} : vector<8x128xf32> to vector<8x32xf32>
    %66 = arith.negf %65 : vector<8x32xf32>
    %67 = math.exp %66 : vector<8x32xf32>
    %cst_26 = arith.constant 1.000000e+00 : f32
    %68 = vector.broadcast %cst_26 : f32 to vector<8x32xf32>
    %69 = arith.addf %68, %67 : vector<8x32xf32>
    %70 = arith.divf %68, %69 : vector<8x32xf32>
    %71 = arith.mulf %62, %39 : vector<8x32xf32>
    %72 = arith.mulf %56, %64 : vector<8x32xf32>
    %73 = arith.addf %71, %72 : vector<8x32xf32>
    %74 = math.tanh %73 : vector<8x32xf32>
    %75 = arith.mulf %70, %74 : vector<8x32xf32>
    %76 = arith.index_cast %c1_i32 : i32 to index
    %c0_27 = arith.constant 0 : index
    %c0_28 = arith.constant 0 : index
    %77 = vector.load %arg8[%76, %c0_27, %c0_28] : memref<8x8x32xf32, #tpu.memory_space<vmem>>, vector<1x8x32xf32>
    %78 = vector.shape_cast %77 : vector<1x8x32xf32> to vector<8x32xf32>
    %79 = vector.shape_cast %75 : vector<8x32xf32> to vector<1x8x32xf32>
    tpu.vector_store %arg8[%76, %c0_27, %c0_28], %79 {strides = array<i32>} : memref<8x8x32xf32, #tpu.memory_space<vmem>>, vector<1x8x32xf32>,
    %c2_i32 = arith.constant 2 : i32
    %80 = arith.index_cast %c2_i32 : i32 to index
    %c0_29 = arith.constant 0 : index
    %c0_30 = arith.constant 0 : index
    %81 = vector.load %arg9[%80, %c0_29, %c0_30] : memref<8x8x128xf32, #tpu.memory_space<vmem>>, vector<1x8x128xf32>
    %82 = vector.shape_cast %81 : vector<1x8x128xf32> to vector<8x128xf32>
    %cst_31 = arith.constant dense<0.000000e+00> : vector<8x128xf32>
    %83 = tpu.matmul %75, %2, %cst_31 {dimension_numbers = #tpu.dot_dimension_numbers<[1], [0], [0], [1], [0, 0, 1, 1], [], []>} : vector<8x32xf32>, vector<32x128xf32>, vector<8x128xf32> -> vector<8x128xf32>
    %84 = arith.addf %82, %83 : vector<8x128xf32>
    %85 = vector.extract_strided_slice %84 {offsets = [0, 0], sizes = [8, 32], strides = [1, 1]} : vector<8x128xf32> to vector<8x32xf32>
    %86 = arith.negf %85 : vector<8x32xf32>
    %87 = math.exp %86 : vector<8x32xf32>
    %cst_32 = arith.constant 1.000000e+00 : f32
    %88 = vector.broadcast %cst_32 : f32 to vector<8x32xf32>
    %89 = arith.addf %88, %87 : vector<8x32xf32>
    %90 = arith.divf %88, %89 : vector<8x32xf32>
    %91 = vector.extract_strided_slice %84 {offsets = [0, 32], sizes = [8, 32], strides = [1, 1]} : vector<8x128xf32> to vector<8x32xf32>
    %92 = arith.negf %91 : vector<8x32xf32>
    %93 = math.exp %92 : vector<8x32xf32>
    %cst_33 = arith.constant 1.000000e+00 : f32
    %94 = vector.broadcast %cst_33 : f32 to vector<8x32xf32>
    %95 = arith.addf %94, %93 : vector<8x32xf32>
    %96 = arith.divf %94, %95 : vector<8x32xf32>
    %97 = vector.extract_strided_slice %84 {offsets = [0, 64], sizes = [8, 32], strides = [1, 1]} : vector<8x128xf32> to vector<8x32xf32>
    %98 = math.tanh %97 : vector<8x32xf32>
    %99 = vector.extract_strided_slice %84 {offsets = [0, 96], sizes = [8, 32], strides = [1, 1]} : vector<8x128xf32> to vector<8x32xf32>
    %100 = arith.negf %99 : vector<8x32xf32>
    %101 = math.exp %100 : vector<8x32xf32>
    %cst_34 = arith.constant 1.000000e+00 : f32
    %102 = vector.broadcast %cst_34 : f32 to vector<8x32xf32>
    %103 = arith.addf %102, %101 : vector<8x32xf32>
    %104 = arith.divf %102, %103 : vector<8x32xf32>
    %105 = arith.mulf %96, %73 : vector<8x32xf32>
    %106 = arith.mulf %90, %98 : vector<8x32xf32>
    %107 = arith.addf %105, %106 : vector<8x32xf32>
    %108 = math.tanh %107 : vector<8x32xf32>
    %109 = arith.mulf %104, %108 : vector<8x32xf32>
    %110 = arith.index_cast %c2_i32 : i32 to index
    %c0_35 = arith.constant 0 : index
    %c0_36 = arith.constant 0 : index
    %111 = vector.load %arg8[%110, %c0_35, %c0_36] : memref<8x8x32xf32, #tpu.memory_space<vmem>>, vector<1x8x32xf32>
    %112 = vector.shape_cast %111 : vector<1x8x32xf32> to vector<8x32xf32>
    %113 = vector.shape_cast %109 : vector<8x32xf32> to vector<1x8x32xf32>
    tpu.vector_store %arg8[%110, %c0_35, %c0_36], %113 {strides = array<i32>} : memref<8x8x32xf32, #tpu.memory_space<vmem>>, vector<1x8x32xf32>,
    %c3_i32 = arith.constant 3 : i32
    %114 = arith.index_cast %c3_i32 : i32 to index
    %c0_37 = arith.constant 0 : index
    %c0_38 = arith.constant 0 : index
    %115 = vector.load %arg9[%114, %c0_37, %c0_38] : memref<8x8x128xf32, #tpu.memory_space<vmem>>, vector<1x8x128xf32>
    %116 = vector.shape_cast %115 : vector<1x8x128xf32> to vector<8x128xf32>
    %cst_39 = arith.constant dense<0.000000e+00> : vector<8x128xf32>
    %117 = tpu.matmul %109, %2, %cst_39 {dimension_numbers = #tpu.dot_dimension_numbers<[1], [0], [0], [1], [0, 0, 1, 1], [], []>} : vector<8x32xf32>, vector<32x128xf32>, vector<8x128xf32> -> vector<8x128xf32>
    %118 = arith.addf %116, %117 : vector<8x128xf32>
    %119 = vector.extract_strided_slice %118 {offsets = [0, 0], sizes = [8, 32], strides = [1, 1]} : vector<8x128xf32> to vector<8x32xf32>
    %120 = arith.negf %119 : vector<8x32xf32>
    %121 = math.exp %120 : vector<8x32xf32>
    %cst_40 = arith.constant 1.000000e+00 : f32
    %122 = vector.broadcast %cst_40 : f32 to vector<8x32xf32>
    %123 = arith.addf %122, %121 : vector<8x32xf32>
    %124 = arith.divf %122, %123 : vector<8x32xf32>
    %125 = vector.extract_strided_slice %118 {offsets = [0, 32], sizes = [8, 32], strides = [1, 1]} : vector<8x128xf32> to vector<8x32xf32>
    %126 = arith.negf %125 : vector<8x32xf32>
    %127 = math.exp %126 : vector<8x32xf32>
    %cst_41 = arith.constant 1.000000e+00 : f32
    %128 = vector.broadcast %cst_41 : f32 to vector<8x32xf32>
    %129 = arith.addf %128, %127 : vector<8x32xf32>
    %130 = arith.divf %128, %129 : vector<8x32xf32>
    %131 = vector.extract_strided_slice %118 {offsets = [0, 64], sizes = [8, 32], strides = [1, 1]} : vector<8x128xf32> to vector<8x32xf32>
    %132 = math.tanh %131 : vector<8x32xf32>
    %133 = vector.extract_strided_slice %118 {offsets = [0, 96], sizes = [8, 32], strides = [1, 1]} : vector<8x128xf32> to vector<8x32xf32>
    %134 = arith.negf %133 : vector<8x32xf32>
    %135 = math.exp %134 : vector<8x32xf32>
    %cst_42 = arith.constant 1.000000e+00 : f32
    %136 = vector.broadcast %cst_42 : f32 to vector<8x32xf32>
    %137 = arith.addf %136, %135 : vector<8x32xf32>
    %138 = arith.divf %136, %137 : vector<8x32xf32>
    %139 = arith.mulf %130, %107 : vector<8x32xf32>
    %140 = arith.mulf %124, %132 : vector<8x32xf32>
    %141 = arith.addf %139, %140 : vector<8x32xf32>
    %142 = math.tanh %141 : vector<8x32xf32>
    %143 = arith.mulf %138, %142 : vector<8x32xf32>
    %144 = arith.index_cast %c3_i32 : i32 to index
    %c0_43 = arith.constant 0 : index
    %c0_44 = arith.constant 0 : index
    %145 = vector.load %arg8[%144, %c0_43, %c0_44] : memref<8x8x32xf32, #tpu.memory_space<vmem>>, vector<1x8x32xf32>
    %146 = vector.shape_cast %145 : vector<1x8x32xf32> to vector<8x32xf32>
    %147 = vector.shape_cast %143 : vector<8x32xf32> to vector<1x8x32xf32>
    tpu.vector_store %arg8[%144, %c0_43, %c0_44], %147 {strides = array<i32>} : memref<8x8x32xf32, #tpu.memory_space<vmem>>, vector<1x8x32xf32>,
    %c4_i32 = arith.constant 4 : i32
    %148 = arith.index_cast %c4_i32 : i32 to index
    %c0_45 = arith.constant 0 : index
    %c0_46 = arith.constant 0 : index
    %149 = vector.load %arg9[%148, %c0_45, %c0_46] : memref<8x8x128xf32, #tpu.memory_space<vmem>>, vector<1x8x128xf32>
    %150 = vector.shape_cast %149 : vector<1x8x128xf32> to vector<8x128xf32>
    %cst_47 = arith.constant dense<0.000000e+00> : vector<8x128xf32>
    %151 = tpu.matmul %143, %2, %cst_47 {dimension_numbers = #tpu.dot_dimension_numbers<[1], [0], [0], [1], [0, 0, 1, 1], [], []>} : vector<8x32xf32>, vector<32x128xf32>, vector<8x128xf32> -> vector<8x128xf32>
    %152 = arith.addf %150, %151 : vector<8x128xf32>
    %153 = vector.extract_strided_slice %152 {offsets = [0, 0], sizes = [8, 32], strides = [1, 1]} : vector<8x128xf32> to vector<8x32xf32>
    %154 = arith.negf %153 : vector<8x32xf32>
    %155 = math.exp %154 : vector<8x32xf32>
    %cst_48 = arith.constant 1.000000e+00 : f32
    %156 = vector.broadcast %cst_48 : f32 to vector<8x32xf32>
    %157 = arith.addf %156, %155 : vector<8x32xf32>
    %158 = arith.divf %156, %157 : vector<8x32xf32>
    %159 = vector.extract_strided_slice %152 {offsets = [0, 32], sizes = [8, 32], strides = [1, 1]} : vector<8x128xf32> to vector<8x32xf32>
    %160 = arith.negf %159 : vector<8x32xf32>
    %161 = math.exp %160 : vector<8x32xf32>
    %cst_49 = arith.constant 1.000000e+00 : f32
    %162 = vector.broadcast %cst_49 : f32 to vector<8x32xf32>
    %163 = arith.addf %162, %161 : vector<8x32xf32>
    %164 = arith.divf %162, %163 : vector<8x32xf32>
    %165 = vector.extract_strided_slice %152 {offsets = [0, 64], sizes = [8, 32], strides = [1, 1]} : vector<8x128xf32> to vector<8x32xf32>
    %166 = math.tanh %165 : vector<8x32xf32>
    %167 = vector.extract_strided_slice %152 {offsets = [0, 96], sizes = [8, 32], strides = [1, 1]} : vector<8x128xf32> to vector<8x32xf32>
    %168 = arith.negf %167 : vector<8x32xf32>
    %169 = math.exp %168 : vector<8x32xf32>
    %cst_50 = arith.constant 1.000000e+00 : f32
    %170 = vector.broadcast %cst_50 : f32 to vector<8x32xf32>
    %171 = arith.addf %170, %169 : vector<8x32xf32>
    %172 = arith.divf %170, %171 : vector<8x32xf32>
    %173 = arith.mulf %164, %141 : vector<8x32xf32>
    %174 = arith.mulf %158, %166 : vector<8x32xf32>
    %175 = arith.addf %173, %174 : vector<8x32xf32>
    %176 = math.tanh %175 : vector<8x32xf32>
    %177 = arith.mulf %172, %176 : vector<8x32xf32>
    %178 = arith.index_cast %c4_i32 : i32 to index
    %c0_51 = arith.constant 0 : index
    %c0_52 = arith.constant 0 : index
    %179 = vector.load %arg8[%178, %c0_51, %c0_52] : memref<8x8x32xf32, #tpu.memory_space<vmem>>, vector<1x8x32xf32>
    %180 = vector.shape_cast %179 : vector<1x8x32xf32> to vector<8x32xf32>
    %181 = vector.shape_cast %177 : vector<8x32xf32> to vector<1x8x32xf32>
    tpu.vector_store %arg8[%178, %c0_51, %c0_52], %181 {strides = array<i32>} : memref<8x8x32xf32, #tpu.memory_space<vmem>>, vector<1x8x32xf32>,
    %c5_i32 = arith.constant 5 : i32
    %182 = arith.index_cast %c5_i32 : i32 to index
    %c0_53 = arith.constant 0 : index
    %c0_54 = arith.constant 0 : index
    %183 = vector.load %arg9[%182, %c0_53, %c0_54] : memref<8x8x128xf32, #tpu.memory_space<vmem>>, vector<1x8x128xf32>
    %184 = vector.shape_cast %183 : vector<1x8x128xf32> to vector<8x128xf32>
    %cst_55 = arith.constant dense<0.000000e+00> : vector<8x128xf32>
    %185 = tpu.matmul %177, %2, %cst_55 {dimension_numbers = #tpu.dot_dimension_numbers<[1], [0], [0], [1], [0, 0, 1, 1], [], []>} : vector<8x32xf32>, vector<32x128xf32>, vector<8x128xf32> -> vector<8x128xf32>
    %186 = arith.addf %184, %185 : vector<8x128xf32>
    %187 = vector.extract_strided_slice %186 {offsets = [0, 0], sizes = [8, 32], strides = [1, 1]} : vector<8x128xf32> to vector<8x32xf32>
    %188 = arith.negf %187 : vector<8x32xf32>
    %189 = math.exp %188 : vector<8x32xf32>
    %cst_56 = arith.constant 1.000000e+00 : f32
    %190 = vector.broadcast %cst_56 : f32 to vector<8x32xf32>
    %191 = arith.addf %190, %189 : vector<8x32xf32>
    %192 = arith.divf %190, %191 : vector<8x32xf32>
    %193 = vector.extract_strided_slice %186 {offsets = [0, 32], sizes = [8, 32], strides = [1, 1]} : vector<8x128xf32> to vector<8x32xf32>
    %194 = arith.negf %193 : vector<8x32xf32>
    %195 = math.exp %194 : vector<8x32xf32>
    %cst_57 = arith.constant 1.000000e+00 : f32
    %196 = vector.broadcast %cst_57 : f32 to vector<8x32xf32>
    %197 = arith.addf %196, %195 : vector<8x32xf32>
    %198 = arith.divf %196, %197 : vector<8x32xf32>
    %199 = vector.extract_strided_slice %186 {offsets = [0, 64], sizes = [8, 32], strides = [1, 1]} : vector<8x128xf32> to vector<8x32xf32>
    %200 = math.tanh %199 : vector<8x32xf32>
    %201 = vector.extract_strided_slice %186 {offsets = [0, 96], sizes = [8, 32], strides = [1, 1]} : vector<8x128xf32> to vector<8x32xf32>
    %202 = arith.negf %201 : vector<8x32xf32>
    %203 = math.exp %202 : vector<8x32xf32>
    %cst_58 = arith.constant 1.000000e+00 : f32
    %204 = vector.broadcast %cst_58 : f32 to vector<8x32xf32>
    %205 = arith.addf %204, %203 : vector<8x32xf32>
    %206 = arith.divf %204, %205 : vector<8x32xf32>
    %207 = arith.mulf %198, %175 : vector<8x32xf32>
    %208 = arith.mulf %192, %200 : vector<8x32xf32>
    %209 = arith.addf %207, %208 : vector<8x32xf32>
    %210 = math.tanh %209 : vector<8x32xf32>
    %211 = arith.mulf %206, %210 : vector<8x32xf32>
    %212 = arith.index_cast %c5_i32 : i32 to index
    %c0_59 = arith.constant 0 : index
    %c0_60 = arith.constant 0 : index
    %213 = vector.load %arg8[%212, %c0_59, %c0_60] : memref<8x8x32xf32, #tpu.memory_space<vmem>>, vector<1x8x32xf32>
    %214 = vector.shape_cast %213 : vector<1x8x32xf32> to vector<8x32xf32>
    %215 = vector.shape_cast %211 : vector<8x32xf32> to vector<1x8x32xf32>
    tpu.vector_store %arg8[%212, %c0_59, %c0_60], %215 {strides = array<i32>} : memref<8x8x32xf32, #tpu.memory_space<vmem>>, vector<1x8x32xf32>,
    %c6_i32 = arith.constant 6 : i32
    %216 = arith.index_cast %c6_i32 : i32 to index
    %c0_61 = arith.constant 0 : index
    %c0_62 = arith.constant 0 : index
    %217 = vector.load %arg9[%216, %c0_61, %c0_62] : memref<8x8x128xf32, #tpu.memory_space<vmem>>, vector<1x8x128xf32>
    %218 = vector.shape_cast %217 : vector<1x8x128xf32> to vector<8x128xf32>
    %cst_63 = arith.constant dense<0.000000e+00> : vector<8x128xf32>
    %219 = tpu.matmul %211, %2, %cst_63 {dimension_numbers = #tpu.dot_dimension_numbers<[1], [0], [0], [1], [0, 0, 1, 1], [], []>} : vector<8x32xf32>, vector<32x128xf32>, vector<8x128xf32> -> vector<8x128xf32>
    %220 = arith.addf %218, %219 : vector<8x128xf32>
    %221 = vector.extract_strided_slice %220 {offsets = [0, 0], sizes = [8, 32], strides = [1, 1]} : vector<8x128xf32> to vector<8x32xf32>
    %222 = arith.negf %221 : vector<8x32xf32>
    %223 = math.exp %222 : vector<8x32xf32>
    %cst_64 = arith.constant 1.000000e+00 : f32
    %224 = vector.broadcast %cst_64 : f32 to vector<8x32xf32>
    %225 = arith.addf %224, %223 : vector<8x32xf32>
    %226 = arith.divf %224, %225 : vector<8x32xf32>
    %227 = vector.extract_strided_slice %220 {offsets = [0, 32], sizes = [8, 32], strides = [1, 1]} : vector<8x128xf32> to vector<8x32xf32>
    %228 = arith.negf %227 : vector<8x32xf32>
    %229 = math.exp %228 : vector<8x32xf32>
    %cst_65 = arith.constant 1.000000e+00 : f32
    %230 = vector.broadcast %cst_65 : f32 to vector<8x32xf32>
    %231 = arith.addf %230, %229 : vector<8x32xf32>
    %232 = arith.divf %230, %231 : vector<8x32xf32>
    %233 = vector.extract_strided_slice %220 {offsets = [0, 64], sizes = [8, 32], strides = [1, 1]} : vector<8x128xf32> to vector<8x32xf32>
    %234 = math.tanh %233 : vector<8x32xf32>
    %235 = vector.extract_strided_slice %220 {offsets = [0, 96], sizes = [8, 32], strides = [1, 1]} : vector<8x128xf32> to vector<8x32xf32>
    %236 = arith.negf %235 : vector<8x32xf32>
    %237 = math.exp %236 : vector<8x32xf32>
    %cst_66 = arith.constant 1.000000e+00 : f32
    %238 = vector.broadcast %cst_66 : f32 to vector<8x32xf32>
    %239 = arith.addf %238, %237 : vector<8x32xf32>
    %240 = arith.divf %238, %239 : vector<8x32xf32>
    %241 = arith.mulf %232, %209 : vector<8x32xf32>
    %242 = arith.mulf %226, %234 : vector<8x32xf32>
    %243 = arith.addf %241, %242 : vector<8x32xf32>
    %244 = math.tanh %243 : vector<8x32xf32>
    %245 = arith.mulf %240, %244 : vector<8x32xf32>
    %246 = arith.index_cast %c6_i32 : i32 to index
    %c0_67 = arith.constant 0 : index
    %c0_68 = arith.constant 0 : index
    %247 = vector.load %arg8[%246, %c0_67, %c0_68] : memref<8x8x32xf32, #tpu.memory_space<vmem>>, vector<1x8x32xf32>
    %248 = vector.shape_cast %247 : vector<1x8x32xf32> to vector<8x32xf32>
    %249 = vector.shape_cast %245 : vector<8x32xf32> to vector<1x8x32xf32>
    tpu.vector_store %arg8[%246, %c0_67, %c0_68], %249 {strides = array<i32>} : memref<8x8x32xf32, #tpu.memory_space<vmem>>, vector<1x8x32xf32>,
    %c7_i32 = arith.constant 7 : i32
    %250 = arith.index_cast %c7_i32 : i32 to index
    %c0_69 = arith.constant 0 : index
    %c0_70 = arith.constant 0 : index
    %251 = vector.load %arg9[%250, %c0_69, %c0_70] : memref<8x8x128xf32, #tpu.memory_space<vmem>>, vector<1x8x128xf32>
    %252 = vector.shape_cast %251 : vector<1x8x128xf32> to vector<8x128xf32>
    %cst_71 = arith.constant dense<0.000000e+00> : vector<8x128xf32>
    %253 = tpu.matmul %245, %2, %cst_71 {dimension_numbers = #tpu.dot_dimension_numbers<[1], [0], [0], [1], [0, 0, 1, 1], [], []>} : vector<8x32xf32>, vector<32x128xf32>, vector<8x128xf32> -> vector<8x128xf32>
    %254 = arith.addf %252, %253 : vector<8x128xf32>
    %255 = vector.extract_strided_slice %254 {offsets = [0, 0], sizes = [8, 32], strides = [1, 1]} : vector<8x128xf32> to vector<8x32xf32>
    %256 = arith.negf %255 : vector<8x32xf32>
    %257 = math.exp %256 : vector<8x32xf32>
    %cst_72 = arith.constant 1.000000e+00 : f32
    %258 = vector.broadcast %cst_72 : f32 to vector<8x32xf32>
    %259 = arith.addf %258, %257 : vector<8x32xf32>
    %260 = arith.divf %258, %259 : vector<8x32xf32>
    %261 = vector.extract_strided_slice %254 {offsets = [0, 32], sizes = [8, 32], strides = [1, 1]} : vector<8x128xf32> to vector<8x32xf32>
    %262 = arith.negf %261 : vector<8x32xf32>
    %263 = math.exp %262 : vector<8x32xf32>
    %cst_73 = arith.constant 1.000000e+00 : f32
    %264 = vector.broadcast %cst_73 : f32 to vector<8x32xf32>
    %265 = arith.addf %264, %263 : vector<8x32xf32>
    %266 = arith.divf %264, %265 : vector<8x32xf32>
    %267 = vector.extract_strided_slice %254 {offsets = [0, 64], sizes = [8, 32], strides = [1, 1]} : vector<8x128xf32> to vector<8x32xf32>
    %268 = math.tanh %267 : vector<8x32xf32>
    %269 = vector.extract_strided_slice %254 {offsets = [0, 96], sizes = [8, 32], strides = [1, 1]} : vector<8x128xf32> to vector<8x32xf32>
    %270 = arith.negf %269 : vector<8x32xf32>
    %271 = math.exp %270 : vector<8x32xf32>
    %cst_74 = arith.constant 1.000000e+00 : f32
    %272 = vector.broadcast %cst_74 : f32 to vector<8x32xf32>
    %273 = arith.addf %272, %271 : vector<8x32xf32>
    %274 = arith.divf %272, %273 : vector<8x32xf32>
    %275 = arith.mulf %266, %243 : vector<8x32xf32>
    %276 = arith.mulf %260, %268 : vector<8x32xf32>
    %277 = arith.addf %275, %276 : vector<8x32xf32>
    %278 = math.tanh %277 : vector<8x32xf32>
    %279 = arith.mulf %274, %278 : vector<8x32xf32>
    %280 = arith.index_cast %c7_i32 : i32 to index
    %c0_75 = arith.constant 0 : index
    %c0_76 = arith.constant 0 : index
    %281 = vector.load %arg8[%280, %c0_75, %c0_76] : memref<8x8x32xf32, #tpu.memory_space<vmem>>, vector<1x8x32xf32>
    %282 = vector.shape_cast %281 : vector<1x8x32xf32> to vector<8x32xf32>
    %283 = vector.shape_cast %279 : vector<8x32xf32> to vector<1x8x32xf32>
    tpu.vector_store %arg8[%280, %c0_75, %c0_76], %283 {strides = array<i32>} : memref<8x8x32xf32, #tpu.memory_space<vmem>>, vector<1x8x32xf32>,
    %c8_i32 = arith.constant 8 : i32
    %c0_77 = arith.constant 0 : index
    %c0_78 = arith.constant 0 : index
    %c0_79 = arith.constant 0 : index
    %284 = vector.load %arg8[%c0_77, %c0_78, %c0_79] : memref<8x8x32xf32, #tpu.memory_space<vmem>>, vector<8x8x32xf32>
    %c0_80 = arith.constant 0 : index
    %c0_81 = arith.constant 0 : index
    %285 = vector.load %arg4[%c0_80, %c0_81] : memref<32x128xf32, #tpu.memory_space<vmem>>, vector<32x128xf32>
    %c0_82 = arith.constant 0 : index
    %c0_83 = arith.constant 0 : index
    %286 = vector.load %arg5[%c0_82, %c0_83] : memref<32x128xf32, #tpu.memory_space<vmem>>, vector<32x128xf32>
    %c0_84 = arith.constant 0 : index
    %c0_85 = arith.constant 0 : index
    %287 = vector.load %arg6[%c0_84, %c0_85] : memref<1x128xf32, #tpu.memory_space<vmem>>, vector<1x128xf32>
    %288 = vector.shape_cast %284 : vector<8x8x32xf32> to vector<64x32xf32>
    %cst_86 = arith.constant dense<0.000000e+00> : vector<64x128xf32>
    %289 = tpu.matmul %288, %285, %cst_86 {dimension_numbers = #tpu.dot_dimension_numbers<[1], [0], [0], [1], [0, 0, 1, 1], [], []>} : vector<64x32xf32>, vector<32x128xf32>, vector<64x128xf32> -> vector<64x128xf32>
    %290 = vector.broadcast %287 : vector<1x128xf32> to vector<64x128xf32>
    %291 = arith.addf %289, %290 : vector<64x128xf32>
    %292 = vector.shape_cast %291 : vector<64x128xf32> to vector<8x8x128xf32>
    %c0_87 = arith.constant 0 : index
    %c0_88 = arith.constant 0 : index
    %c0_89 = arith.constant 0 : index
    %293 = vector.load %arg9[%c0_87, %c0_88, %c0_89] : memref<8x8x128xf32, #tpu.memory_space<vmem>>, vector<8x8x128xf32>
    tpu.vector_store %arg9[%c0_87, %c0_88, %c0_89], %292 {strides = array<i32>} : memref<8x8x128xf32, #tpu.memory_space<vmem>>, vector<8x8x128xf32>,
    %cst_90 = arith.constant 0.000000e+00 : f32
    %294 = vector.broadcast %cst_90 : f32 to vector<8x32xf32>
    %cst_91 = arith.constant 0.000000e+00 : f32
    %295 = vector.broadcast %cst_91 : f32 to vector<8x32xf32>
    %c0_i32_92 = arith.constant 0 : i32
    %296 = arith.index_cast %c0_i32_92 : i32 to index
    %c0_93 = arith.constant 0 : index
    %c0_94 = arith.constant 0 : index
    %297 = vector.load %arg9[%296, %c0_93, %c0_94] : memref<8x8x128xf32, #tpu.memory_space<vmem>>, vector<1x8x128xf32>
    %298 = vector.shape_cast %297 : vector<1x8x128xf32> to vector<8x128xf32>
    %cst_95 = arith.constant dense<0.000000e+00> : vector<8x128xf32>
    %299 = tpu.matmul %294, %286, %cst_95 {dimension_numbers = #tpu.dot_dimension_numbers<[1], [0], [0], [1], [0, 0, 1, 1], [], []>} : vector<8x32xf32>, vector<32x128xf32>, vector<8x128xf32> -> vector<8x128xf32>
    %300 = arith.addf %298, %299 : vector<8x128xf32>
    %301 = vector.extract_strided_slice %300 {offsets = [0, 0], sizes = [8, 32], strides = [1, 1]} : vector<8x128xf32> to vector<8x32xf32>
    %302 = arith.negf %301 : vector<8x32xf32>
    %303 = math.exp %302 : vector<8x32xf32>
    %cst_96 = arith.constant 1.000000e+00 : f32
    %304 = vector.broadcast %cst_96 : f32 to vector<8x32xf32>
    %305 = arith.addf %304, %303 : vector<8x32xf32>
    %306 = arith.divf %304, %305 : vector<8x32xf32>
    %307 = vector.extract_strided_slice %300 {offsets = [0, 32], sizes = [8, 32], strides = [1, 1]} : vector<8x128xf32> to vector<8x32xf32>
    %308 = arith.negf %307 : vector<8x32xf32>
    %309 = math.exp %308 : vector<8x32xf32>
    %cst_97 = arith.constant 1.000000e+00 : f32
    %310 = vector.broadcast %cst_97 : f32 to vector<8x32xf32>
    %311 = arith.addf %310, %309 : vector<8x32xf32>
    %312 = arith.divf %310, %311 : vector<8x32xf32>
    %313 = vector.extract_strided_slice %300 {offsets = [0, 64], sizes = [8, 32], strides = [1, 1]} : vector<8x128xf32> to vector<8x32xf32>
    %314 = math.tanh %313 : vector<8x32xf32>
    %315 = vector.extract_strided_slice %300 {offsets = [0, 96], sizes = [8, 32], strides = [1, 1]} : vector<8x128xf32> to vector<8x32xf32>
    %316 = arith.negf %315 : vector<8x32xf32>
    %317 = math.exp %316 : vector<8x32xf32>
    %cst_98 = arith.constant 1.000000e+00 : f32
    %318 = vector.broadcast %cst_98 : f32 to vector<8x32xf32>
    %319 = arith.addf %318, %317 : vector<8x32xf32>
    %320 = arith.divf %318, %319 : vector<8x32xf32>
    %321 = arith.mulf %312, %295 : vector<8x32xf32>
    %322 = arith.mulf %306, %314 : vector<8x32xf32>
    %323 = arith.addf %321, %322 : vector<8x32xf32>
    %324 = math.tanh %323 : vector<8x32xf32>
    %325 = arith.mulf %320, %324 : vector<8x32xf32>
    %326 = arith.index_cast %c0_i32_92 : i32 to index
    %c0_99 = arith.constant 0 : index
    %c0_100 = arith.constant 0 : index
    %327 = vector.load %arg7[%326, %c0_99, %c0_100] : memref<8x8x32xf32, #tpu.memory_space<vmem>>, vector<1x8x32xf32>
    %328 = vector.shape_cast %327 : vector<1x8x32xf32> to vector<8x32xf32>
    %329 = vector.shape_cast %325 : vector<8x32xf32> to vector<1x8x32xf32>
    tpu.vector_store %arg7[%326, %c0_99, %c0_100], %329 {strides = array<i32>} : memref<8x8x32xf32, #tpu.memory_space<vmem>>, vector<1x8x32xf32>,
    %c1_i32_101 = arith.constant 1 : i32
    %330 = arith.index_cast %c1_i32_101 : i32 to index
    %c0_102 = arith.constant 0 : index
    %c0_103 = arith.constant 0 : index
    %331 = vector.load %arg9[%330, %c0_102, %c0_103] : memref<8x8x128xf32, #tpu.memory_space<vmem>>, vector<1x8x128xf32>
    %332 = vector.shape_cast %331 : vector<1x8x128xf32> to vector<8x128xf32>
    %cst_104 = arith.constant dense<0.000000e+00> : vector<8x128xf32>
    %333 = tpu.matmul %325, %286, %cst_104 {dimension_numbers = #tpu.dot_dimension_numbers<[1], [0], [0], [1], [0, 0, 1, 1], [], []>} : vector<8x32xf32>, vector<32x128xf32>, vector<8x128xf32> -> vector<8x128xf32>
    %334 = arith.addf %332, %333 : vector<8x128xf32>
    %335 = vector.extract_strided_slice %334 {offsets = [0, 0], sizes = [8, 32], strides = [1, 1]} : vector<8x128xf32> to vector<8x32xf32>
    %336 = arith.negf %335 : vector<8x32xf32>
    %337 = math.exp %336 : vector<8x32xf32>
    %cst_105 = arith.constant 1.000000e+00 : f32
    %338 = vector.broadcast %cst_105 : f32 to vector<8x32xf32>
    %339 = arith.addf %338, %337 : vector<8x32xf32>
    %340 = arith.divf %338, %339 : vector<8x32xf32>
    %341 = vector.extract_strided_slice %334 {offsets = [0, 32], sizes = [8, 32], strides = [1, 1]} : vector<8x128xf32> to vector<8x32xf32>
    %342 = arith.negf %341 : vector<8x32xf32>
    %343 = math.exp %342 : vector<8x32xf32>
    %cst_106 = arith.constant 1.000000e+00 : f32
    %344 = vector.broadcast %cst_106 : f32 to vector<8x32xf32>
    %345 = arith.addf %344, %343 : vector<8x32xf32>
    %346 = arith.divf %344, %345 : vector<8x32xf32>
    %347 = vector.extract_strided_slice %334 {offsets = [0, 64], sizes = [8, 32], strides = [1, 1]} : vector<8x128xf32> to vector<8x32xf32>
    %348 = math.tanh %347 : vector<8x32xf32>
    %349 = vector.extract_strided_slice %334 {offsets = [0, 96], sizes = [8, 32], strides = [1, 1]} : vector<8x128xf32> to vector<8x32xf32>
    %350 = arith.negf %349 : vector<8x32xf32>
    %351 = math.exp %350 : vector<8x32xf32>
    %cst_107 = arith.constant 1.000000e+00 : f32
    %352 = vector.broadcast %cst_107 : f32 to vector<8x32xf32>
    %353 = arith.addf %352, %351 : vector<8x32xf32>
    %354 = arith.divf %352, %353 : vector<8x32xf32>
    %355 = arith.mulf %346, %323 : vector<8x32xf32>
    %356 = arith.mulf %340, %348 : vector<8x32xf32>
    %357 = arith.addf %355, %356 : vector<8x32xf32>
    %358 = math.tanh %357 : vector<8x32xf32>
    %359 = arith.mulf %354, %358 : vector<8x32xf32>
    %360 = arith.index_cast %c1_i32_101 : i32 to index
    %c0_108 = arith.constant 0 : index
    %c0_109 = arith.constant 0 : index
    %361 = vector.load %arg7[%360, %c0_108, %c0_109] : memref<8x8x32xf32, #tpu.memory_space<vmem>>, vector<1x8x32xf32>
    %362 = vector.shape_cast %361 : vector<1x8x32xf32> to vector<8x32xf32>
    %363 = vector.shape_cast %359 : vector<8x32xf32> to vector<1x8x32xf32>
    tpu.vector_store %arg7[%360, %c0_108, %c0_109], %363 {strides = array<i32>} : memref<8x8x32xf32, #tpu.memory_space<vmem>>, vector<1x8x32xf32>,
    %c2_i32_110 = arith.constant 2 : i32
    %364 = arith.index_cast %c2_i32_110 : i32 to index
    %c0_111 = arith.constant 0 : index
    %c0_112 = arith.constant 0 : index
    %365 = vector.load %arg9[%364, %c0_111, %c0_112] : memref<8x8x128xf32, #tpu.memory_space<vmem>>, vector<1x8x128xf32>
    %366 = vector.shape_cast %365 : vector<1x8x128xf32> to vector<8x128xf32>
    %cst_113 = arith.constant dense<0.000000e+00> : vector<8x128xf32>
    %367 = tpu.matmul %359, %286, %cst_113 {dimension_numbers = #tpu.dot_dimension_numbers<[1], [0], [0], [1], [0, 0, 1, 1], [], []>} : vector<8x32xf32>, vector<32x128xf32>, vector<8x128xf32> -> vector<8x128xf32>
    %368 = arith.addf %366, %367 : vector<8x128xf32>
    %369 = vector.extract_strided_slice %368 {offsets = [0, 0], sizes = [8, 32], strides = [1, 1]} : vector<8x128xf32> to vector<8x32xf32>
    %370 = arith.negf %369 : vector<8x32xf32>
    %371 = math.exp %370 : vector<8x32xf32>
    %cst_114 = arith.constant 1.000000e+00 : f32
    %372 = vector.broadcast %cst_114 : f32 to vector<8x32xf32>
    %373 = arith.addf %372, %371 : vector<8x32xf32>
    %374 = arith.divf %372, %373 : vector<8x32xf32>
    %375 = vector.extract_strided_slice %368 {offsets = [0, 32], sizes = [8, 32], strides = [1, 1]} : vector<8x128xf32> to vector<8x32xf32>
    %376 = arith.negf %375 : vector<8x32xf32>
    %377 = math.exp %376 : vector<8x32xf32>
    %cst_115 = arith.constant 1.000000e+00 : f32
    %378 = vector.broadcast %cst_115 : f32 to vector<8x32xf32>
    %379 = arith.addf %378, %377 : vector<8x32xf32>
    %380 = arith.divf %378, %379 : vector<8x32xf32>
    %381 = vector.extract_strided_slice %368 {offsets = [0, 64], sizes = [8, 32], strides = [1, 1]} : vector<8x128xf32> to vector<8x32xf32>
    %382 = math.tanh %381 : vector<8x32xf32>
    %383 = vector.extract_strided_slice %368 {offsets = [0, 96], sizes = [8, 32], strides = [1, 1]} : vector<8x128xf32> to vector<8x32xf32>
    %384 = arith.negf %383 : vector<8x32xf32>
    %385 = math.exp %384 : vector<8x32xf32>
    %cst_116 = arith.constant 1.000000e+00 : f32
    %386 = vector.broadcast %cst_116 : f32 to vector<8x32xf32>
    %387 = arith.addf %386, %385 : vector<8x32xf32>
    %388 = arith.divf %386, %387 : vector<8x32xf32>
    %389 = arith.mulf %380, %357 : vector<8x32xf32>
    %390 = arith.mulf %374, %382 : vector<8x32xf32>
    %391 = arith.addf %389, %390 : vector<8x32xf32>
    %392 = math.tanh %391 : vector<8x32xf32>
    %393 = arith.mulf %388, %392 : vector<8x32xf32>
    %394 = arith.index_cast %c2_i32_110 : i32 to index
    %c0_117 = arith.constant 0 : index
    %c0_118 = arith.constant 0 : index
    %395 = vector.load %arg7[%394, %c0_117, %c0_118] : memref<8x8x32xf32, #tpu.memory_space<vmem>>, vector<1x8x32xf32>
    %396 = vector.shape_cast %395 : vector<1x8x32xf32> to vector<8x32xf32>
    %397 = vector.shape_cast %393 : vector<8x32xf32> to vector<1x8x32xf32>
    tpu.vector_store %arg7[%394, %c0_117, %c0_118], %397 {strides = array<i32>} : memref<8x8x32xf32, #tpu.memory_space<vmem>>, vector<1x8x32xf32>,
    %c3_i32_119 = arith.constant 3 : i32
    %398 = arith.index_cast %c3_i32_119 : i32 to index
    %c0_120 = arith.constant 0 : index
    %c0_121 = arith.constant 0 : index
    %399 = vector.load %arg9[%398, %c0_120, %c0_121] : memref<8x8x128xf32, #tpu.memory_space<vmem>>, vector<1x8x128xf32>
    %400 = vector.shape_cast %399 : vector<1x8x128xf32> to vector<8x128xf32>
    %cst_122 = arith.constant dense<0.000000e+00> : vector<8x128xf32>
    %401 = tpu.matmul %393, %286, %cst_122 {dimension_numbers = #tpu.dot_dimension_numbers<[1], [0], [0], [1], [0, 0, 1, 1], [], []>} : vector<8x32xf32>, vector<32x128xf32>, vector<8x128xf32> -> vector<8x128xf32>
    %402 = arith.addf %400, %401 : vector<8x128xf32>
    %403 = vector.extract_strided_slice %402 {offsets = [0, 0], sizes = [8, 32], strides = [1, 1]} : vector<8x128xf32> to vector<8x32xf32>
    %404 = arith.negf %403 : vector<8x32xf32>
    %405 = math.exp %404 : vector<8x32xf32>
    %cst_123 = arith.constant 1.000000e+00 : f32
    %406 = vector.broadcast %cst_123 : f32 to vector<8x32xf32>
    %407 = arith.addf %406, %405 : vector<8x32xf32>
    %408 = arith.divf %406, %407 : vector<8x32xf32>
    %409 = vector.extract_strided_slice %402 {offsets = [0, 32], sizes = [8, 32], strides = [1, 1]} : vector<8x128xf32> to vector<8x32xf32>
    %410 = arith.negf %409 : vector<8x32xf32>
    %411 = math.exp %410 : vector<8x32xf32>
    %cst_124 = arith.constant 1.000000e+00 : f32
    %412 = vector.broadcast %cst_124 : f32 to vector<8x32xf32>
    %413 = arith.addf %412, %411 : vector<8x32xf32>
    %414 = arith.divf %412, %413 : vector<8x32xf32>
    %415 = vector.extract_strided_slice %402 {offsets = [0, 64], sizes = [8, 32], strides = [1, 1]} : vector<8x128xf32> to vector<8x32xf32>
    %416 = math.tanh %415 : vector<8x32xf32>
    %417 = vector.extract_strided_slice %402 {offsets = [0, 96], sizes = [8, 32], strides = [1, 1]} : vector<8x128xf32> to vector<8x32xf32>
    %418 = arith.negf %417 : vector<8x32xf32>
    %419 = math.exp %418 : vector<8x32xf32>
    %cst_125 = arith.constant 1.000000e+00 : f32
    %420 = vector.broadcast %cst_125 : f32 to vector<8x32xf32>
    %421 = arith.addf %420, %419 : vector<8x32xf32>
    %422 = arith.divf %420, %421 : vector<8x32xf32>
    %423 = arith.mulf %414, %391 : vector<8x32xf32>
    %424 = arith.mulf %408, %416 : vector<8x32xf32>
    %425 = arith.addf %423, %424 : vector<8x32xf32>
    %426 = math.tanh %425 : vector<8x32xf32>
    %427 = arith.mulf %422, %426 : vector<8x32xf32>
    %428 = arith.index_cast %c3_i32_119 : i32 to index
    %c0_126 = arith.constant 0 : index
    %c0_127 = arith.constant 0 : index
    %429 = vector.load %arg7[%428, %c0_126, %c0_127] : memref<8x8x32xf32, #tpu.memory_space<vmem>>, vector<1x8x32xf32>
    %430 = vector.shape_cast %429 : vector<1x8x32xf32> to vector<8x32xf32>
    %431 = vector.shape_cast %427 : vector<8x32xf32> to vector<1x8x32xf32>
    tpu.vector_store %arg7[%428, %c0_126, %c0_127], %431 {strides = array<i32>} : memref<8x8x32xf32, #tpu.memory_space<vmem>>, vector<1x8x32xf32>,
    %c4_i32_128 = arith.constant 4 : i32
    %432 = arith.index_cast %c4_i32_128 : i32 to index
    %c0_129 = arith.constant 0 : index
    %c0_130 = arith.constant 0 : index
    %433 = vector.load %arg9[%432, %c0_129, %c0_130] : memref<8x8x128xf32, #tpu.memory_space<vmem>>, vector<1x8x128xf32>
    %434 = vector.shape_cast %433 : vector<1x8x128xf32> to vector<8x128xf32>
    %cst_131 = arith.constant dense<0.000000e+00> : vector<8x128xf32>
    %435 = tpu.matmul %427, %286, %cst_131 {dimension_numbers = #tpu.dot_dimension_numbers<[1], [0], [0], [1], [0, 0, 1, 1], [], []>} : vector<8x32xf32>, vector<32x128xf32>, vector<8x128xf32> -> vector<8x128xf32>
    %436 = arith.addf %434, %435 : vector<8x128xf32>
    %437 = vector.extract_strided_slice %436 {offsets = [0, 0], sizes = [8, 32], strides = [1, 1]} : vector<8x128xf32> to vector<8x32xf32>
    %438 = arith.negf %437 : vector<8x32xf32>
    %439 = math.exp %438 : vector<8x32xf32>
    %cst_132 = arith.constant 1.000000e+00 : f32
    %440 = vector.broadcast %cst_132 : f32 to vector<8x32xf32>
    %441 = arith.addf %440, %439 : vector<8x32xf32>
    %442 = arith.divf %440, %441 : vector<8x32xf32>
    %443 = vector.extract_strided_slice %436 {offsets = [0, 32], sizes = [8, 32], strides = [1, 1]} : vector<8x128xf32> to vector<8x32xf32>
    %444 = arith.negf %443 : vector<8x32xf32>
    %445 = math.exp %444 : vector<8x32xf32>
    %cst_133 = arith.constant 1.000000e+00 : f32
    %446 = vector.broadcast %cst_133 : f32 to vector<8x32xf32>
    %447 = arith.addf %446, %445 : vector<8x32xf32>
    %448 = arith.divf %446, %447 : vector<8x32xf32>
    %449 = vector.extract_strided_slice %436 {offsets = [0, 64], sizes = [8, 32], strides = [1, 1]} : vector<8x128xf32> to vector<8x32xf32>
    %450 = math.tanh %449 : vector<8x32xf32>
    %451 = vector.extract_strided_slice %436 {offsets = [0, 96], sizes = [8, 32], strides = [1, 1]} : vector<8x128xf32> to vector<8x32xf32>
    %452 = arith.negf %451 : vector<8x32xf32>
    %453 = math.exp %452 : vector<8x32xf32>
    %cst_134 = arith.constant 1.000000e+00 : f32
    %454 = vector.broadcast %cst_134 : f32 to vector<8x32xf32>
    %455 = arith.addf %454, %453 : vector<8x32xf32>
    %456 = arith.divf %454, %455 : vector<8x32xf32>
    %457 = arith.mulf %448, %425 : vector<8x32xf32>
    %458 = arith.mulf %442, %450 : vector<8x32xf32>
    %459 = arith.addf %457, %458 : vector<8x32xf32>
    %460 = math.tanh %459 : vector<8x32xf32>
    %461 = arith.mulf %456, %460 : vector<8x32xf32>
    %462 = arith.index_cast %c4_i32_128 : i32 to index
    %c0_135 = arith.constant 0 : index
    %c0_136 = arith.constant 0 : index
    %463 = vector.load %arg7[%462, %c0_135, %c0_136] : memref<8x8x32xf32, #tpu.memory_space<vmem>>, vector<1x8x32xf32>
    %464 = vector.shape_cast %463 : vector<1x8x32xf32> to vector<8x32xf32>
    %465 = vector.shape_cast %461 : vector<8x32xf32> to vector<1x8x32xf32>
    tpu.vector_store %arg7[%462, %c0_135, %c0_136], %465 {strides = array<i32>} : memref<8x8x32xf32, #tpu.memory_space<vmem>>, vector<1x8x32xf32>,
    %c5_i32_137 = arith.constant 5 : i32
    %466 = arith.index_cast %c5_i32_137 : i32 to index
    %c0_138 = arith.constant 0 : index
    %c0_139 = arith.constant 0 : index
    %467 = vector.load %arg9[%466, %c0_138, %c0_139] : memref<8x8x128xf32, #tpu.memory_space<vmem>>, vector<1x8x128xf32>
    %468 = vector.shape_cast %467 : vector<1x8x128xf32> to vector<8x128xf32>
    %cst_140 = arith.constant dense<0.000000e+00> : vector<8x128xf32>
    %469 = tpu.matmul %461, %286, %cst_140 {dimension_numbers = #tpu.dot_dimension_numbers<[1], [0], [0], [1], [0, 0, 1, 1], [], []>} : vector<8x32xf32>, vector<32x128xf32>, vector<8x128xf32> -> vector<8x128xf32>
    %470 = arith.addf %468, %469 : vector<8x128xf32>
    %471 = vector.extract_strided_slice %470 {offsets = [0, 0], sizes = [8, 32], strides = [1, 1]} : vector<8x128xf32> to vector<8x32xf32>
    %472 = arith.negf %471 : vector<8x32xf32>
    %473 = math.exp %472 : vector<8x32xf32>
    %cst_141 = arith.constant 1.000000e+00 : f32
    %474 = vector.broadcast %cst_141 : f32 to vector<8x32xf32>
    %475 = arith.addf %474, %473 : vector<8x32xf32>
    %476 = arith.divf %474, %475 : vector<8x32xf32>
    %477 = vector.extract_strided_slice %470 {offsets = [0, 32], sizes = [8, 32], strides = [1, 1]} : vector<8x128xf32> to vector<8x32xf32>
    %478 = arith.negf %477 : vector<8x32xf32>
    %479 = math.exp %478 : vector<8x32xf32>
    %cst_142 = arith.constant 1.000000e+00 : f32
    %480 = vector.broadcast %cst_142 : f32 to vector<8x32xf32>
    %481 = arith.addf %480, %479 : vector<8x32xf32>
    %482 = arith.divf %480, %481 : vector<8x32xf32>
    %483 = vector.extract_strided_slice %470 {offsets = [0, 64], sizes = [8, 32], strides = [1, 1]} : vector<8x128xf32> to vector<8x32xf32>
    %484 = math.tanh %483 : vector<8x32xf32>
    %485 = vector.extract_strided_slice %470 {offsets = [0, 96], sizes = [8, 32], strides = [1, 1]} : vector<8x128xf32> to vector<8x32xf32>
    %486 = arith.negf %485 : vector<8x32xf32>
    %487 = math.exp %486 : vector<8x32xf32>
    %cst_143 = arith.constant 1.000000e+00 : f32
    %488 = vector.broadcast %cst_143 : f32 to vector<8x32xf32>
    %489 = arith.addf %488, %487 : vector<8x32xf32>
    %490 = arith.divf %488, %489 : vector<8x32xf32>
    %491 = arith.mulf %482, %459 : vector<8x32xf32>
    %492 = arith.mulf %476, %484 : vector<8x32xf32>
    %493 = arith.addf %491, %492 : vector<8x32xf32>
    %494 = math.tanh %493 : vector<8x32xf32>
    %495 = arith.mulf %490, %494 : vector<8x32xf32>
    %496 = arith.index_cast %c5_i32_137 : i32 to index
    %c0_144 = arith.constant 0 : index
    %c0_145 = arith.constant 0 : index
    %497 = vector.load %arg7[%496, %c0_144, %c0_145] : memref<8x8x32xf32, #tpu.memory_space<vmem>>, vector<1x8x32xf32>
    %498 = vector.shape_cast %497 : vector<1x8x32xf32> to vector<8x32xf32>
    %499 = vector.shape_cast %495 : vector<8x32xf32> to vector<1x8x32xf32>
    tpu.vector_store %arg7[%496, %c0_144, %c0_145], %499 {strides = array<i32>} : memref<8x8x32xf32, #tpu.memory_space<vmem>>, vector<1x8x32xf32>,
    %c6_i32_146 = arith.constant 6 : i32
    %500 = arith.index_cast %c6_i32_146 : i32 to index
    %c0_147 = arith.constant 0 : index
    %c0_148 = arith.constant 0 : index
    %501 = vector.load %arg9[%500, %c0_147, %c0_148] : memref<8x8x128xf32, #tpu.memory_space<vmem>>, vector<1x8x128xf32>
    %502 = vector.shape_cast %501 : vector<1x8x128xf32> to vector<8x128xf32>
    %cst_149 = arith.constant dense<0.000000e+00> : vector<8x128xf32>
    %503 = tpu.matmul %495, %286, %cst_149 {dimension_numbers = #tpu.dot_dimension_numbers<[1], [0], [0], [1], [0, 0, 1, 1], [], []>} : vector<8x32xf32>, vector<32x128xf32>, vector<8x128xf32> -> vector<8x128xf32>
    %504 = arith.addf %502, %503 : vector<8x128xf32>
    %505 = vector.extract_strided_slice %504 {offsets = [0, 0], sizes = [8, 32], strides = [1, 1]} : vector<8x128xf32> to vector<8x32xf32>
    %506 = arith.negf %505 : vector<8x32xf32>
    %507 = math.exp %506 : vector<8x32xf32>
    %cst_150 = arith.constant 1.000000e+00 : f32
    %508 = vector.broadcast %cst_150 : f32 to vector<8x32xf32>
    %509 = arith.addf %508, %507 : vector<8x32xf32>
    %510 = arith.divf %508, %509 : vector<8x32xf32>
    %511 = vector.extract_strided_slice %504 {offsets = [0, 32], sizes = [8, 32], strides = [1, 1]} : vector<8x128xf32> to vector<8x32xf32>
    %512 = arith.negf %511 : vector<8x32xf32>
    %513 = math.exp %512 : vector<8x32xf32>
    %cst_151 = arith.constant 1.000000e+00 : f32
    %514 = vector.broadcast %cst_151 : f32 to vector<8x32xf32>
    %515 = arith.addf %514, %513 : vector<8x32xf32>
    %516 = arith.divf %514, %515 : vector<8x32xf32>
    %517 = vector.extract_strided_slice %504 {offsets = [0, 64], sizes = [8, 32], strides = [1, 1]} : vector<8x128xf32> to vector<8x32xf32>
    %518 = math.tanh %517 : vector<8x32xf32>
    %519 = vector.extract_strided_slice %504 {offsets = [0, 96], sizes = [8, 32], strides = [1, 1]} : vector<8x128xf32> to vector<8x32xf32>
    %520 = arith.negf %519 : vector<8x32xf32>
    %521 = math.exp %520 : vector<8x32xf32>
    %cst_152 = arith.constant 1.000000e+00 : f32
    %522 = vector.broadcast %cst_152 : f32 to vector<8x32xf32>
    %523 = arith.addf %522, %521 : vector<8x32xf32>
    %524 = arith.divf %522, %523 : vector<8x32xf32>
    %525 = arith.mulf %516, %493 : vector<8x32xf32>
    %526 = arith.mulf %510, %518 : vector<8x32xf32>
    %527 = arith.addf %525, %526 : vector<8x32xf32>
    %528 = math.tanh %527 : vector<8x32xf32>
    %529 = arith.mulf %524, %528 : vector<8x32xf32>
    %530 = arith.index_cast %c6_i32_146 : i32 to index
    %c0_153 = arith.constant 0 : index
    %c0_154 = arith.constant 0 : index
    %531 = vector.load %arg7[%530, %c0_153, %c0_154] : memref<8x8x32xf32, #tpu.memory_space<vmem>>, vector<1x8x32xf32>
    %532 = vector.shape_cast %531 : vector<1x8x32xf32> to vector<8x32xf32>
    %533 = vector.shape_cast %529 : vector<8x32xf32> to vector<1x8x32xf32>
    tpu.vector_store %arg7[%530, %c0_153, %c0_154], %533 {strides = array<i32>} : memref<8x8x32xf32, #tpu.memory_space<vmem>>, vector<1x8x32xf32>,
    %c7_i32_155 = arith.constant 7 : i32
    %534 = arith.index_cast %c7_i32_155 : i32 to index
    %c0_156 = arith.constant 0 : index
    %c0_157 = arith.constant 0 : index
    %535 = vector.load %arg9[%534, %c0_156, %c0_157] : memref<8x8x128xf32, #tpu.memory_space<vmem>>, vector<1x8x128xf32>
    %536 = vector.shape_cast %535 : vector<1x8x128xf32> to vector<8x128xf32>
    %cst_158 = arith.constant dense<0.000000e+00> : vector<8x128xf32>
    %537 = tpu.matmul %529, %286, %cst_158 {dimension_numbers = #tpu.dot_dimension_numbers<[1], [0], [0], [1], [0, 0, 1, 1], [], []>} : vector<8x32xf32>, vector<32x128xf32>, vector<8x128xf32> -> vector<8x128xf32>
    %538 = arith.addf %536, %537 : vector<8x128xf32>
    %539 = vector.extract_strided_slice %538 {offsets = [0, 0], sizes = [8, 32], strides = [1, 1]} : vector<8x128xf32> to vector<8x32xf32>
    %540 = arith.negf %539 : vector<8x32xf32>
    %541 = math.exp %540 : vector<8x32xf32>
    %cst_159 = arith.constant 1.000000e+00 : f32
    %542 = vector.broadcast %cst_159 : f32 to vector<8x32xf32>
    %543 = arith.addf %542, %541 : vector<8x32xf32>
    %544 = arith.divf %542, %543 : vector<8x32xf32>
    %545 = vector.extract_strided_slice %538 {offsets = [0, 32], sizes = [8, 32], strides = [1, 1]} : vector<8x128xf32> to vector<8x32xf32>
    %546 = arith.negf %545 : vector<8x32xf32>
    %547 = math.exp %546 : vector<8x32xf32>
    %cst_160 = arith.constant 1.000000e+00 : f32
    %548 = vector.broadcast %cst_160 : f32 to vector<8x32xf32>
    %549 = arith.addf %548, %547 : vector<8x32xf32>
    %550 = arith.divf %548, %549 : vector<8x32xf32>
    %551 = vector.extract_strided_slice %538 {offsets = [0, 64], sizes = [8, 32], strides = [1, 1]} : vector<8x128xf32> to vector<8x32xf32>
    %552 = math.tanh %551 : vector<8x32xf32>
    %553 = vector.extract_strided_slice %538 {offsets = [0, 96], sizes = [8, 32], strides = [1, 1]} : vector<8x128xf32> to vector<8x32xf32>
    %554 = arith.negf %553 : vector<8x32xf32>
    %555 = math.exp %554 : vector<8x32xf32>
    %cst_161 = arith.constant 1.000000e+00 : f32
    %556 = vector.broadcast %cst_161 : f32 to vector<8x32xf32>
    %557 = arith.addf %556, %555 : vector<8x32xf32>
    %558 = arith.divf %556, %557 : vector<8x32xf32>
    %559 = arith.mulf %550, %527 : vector<8x32xf32>
    %560 = arith.mulf %544, %552 : vector<8x32xf32>
    %561 = arith.addf %559, %560 : vector<8x32xf32>
    %562 = math.tanh %561 : vector<8x32xf32>
    %563 = arith.mulf %558, %562 : vector<8x32xf32>
    %564 = arith.index_cast %c7_i32_155 : i32 to index
    %c0_162 = arith.constant 0 : index
    %c0_163 = arith.constant 0 : index
    %565 = vector.load %arg7[%564, %c0_162, %c0_163] : memref<8x8x32xf32, #tpu.memory_space<vmem>>, vector<1x8x32xf32>
    %566 = vector.shape_cast %565 : vector<1x8x32xf32> to vector<8x32xf32>
    %567 = vector.shape_cast %563 : vector<8x32xf32> to vector<1x8x32xf32>
    tpu.vector_store %arg7[%564, %c0_162, %c0_163], %567 {strides = array<i32>} : memref<8x8x32xf32, #tpu.memory_space<vmem>>, vector<1x8x32xf32>,
    %c8_i32_164 = arith.constant 8 : i32
    return
  }
}

</mosaic_0001>

<bundles_post_ra>
// kernel: tpu_custom_call.1
= control target key start
LH: loop header
LB: loop body
LE: loop exit
PB: predicated region body
PF: predicated region fallthrough
CT: control target
= control target key end

     0   :  { %12 = vsyncpa [#allocation5], 0  ;;  %s3289_s0 = inlined_call_operand.hbm [shape: f32[8,8,16], index: 0, kind: input, shape index: {}]   ;;  %s3290_s1 = inlined_call_operand.hbm [shape: f32[16,128], index: 1, kind: input, shape index: {}]   ;;  %s3291_s2 = inlined_call_operand.hbm [shape: f32[32,128], index: 2, kind: input, shape index: {}]   ;;  %s3292_s3 = inlined_call_operand.vmem [shape: f32[1,128], index: 3, kind: input, shape index: {}]   ;;  %s3293_s4 = inlined_call_operand.hbm [shape: f32[32,128], index: 4, kind: input, shape index: {}]   ;;  %s3294_s5 = inlined_call_operand.hbm [shape: f32[32,128], index: 5, kind: input, shape index: {}]   ;;  %s3295_s6 = inlined_call_operand.vmem [shape: f32[1,128], index: 6, kind: input, shape index: {}]   ;;  %s3296_s7 = inlined_call_operand.hbm [shape: f32[8,8,32], index: 7, kind: output, shape index: {}]  }
   0x1   :  { %13 = vsyncpa [#allocation8], 0 }
   0x2   :  { %14 = vsyncpa [#allocation11], 0 }
   0x3   :  { %15 = vsyncpa [#allocation6], 0  ;;  %s2853_s24 = smov [#allocation7]   ;;  %s2854_s26 = smov [#allocation10]  }
   0x4   :  { %s33_s25 = sshll.u32 %s2853_s24, 4  ;;  %s59_s27 = sshll.u32 %s2854_s26, 4  ;;  %s34_s25 = int_to_ptr.vmem [resolvable:$true] %s33_s25  ;;  %s2906_s27 = int_to_ptr.vmem [resolvable:$true] %s59_s27 }
   0x5   :  { %s2713_s30 = scalar_lea.hbm %s3290_s1, 256 }
   0x6   :  { %p2714_p0 = scmp.ne.s32.totalorder %s3290_s1, %s2713_s30  ;;  %p2717_p1 = scmp.lt.u32.totalorder %s2713_s30, %s3290_s1 }
   0x8   :  { %p2719_p2 = pnand %p2717_p1, %p2714_p0 }
   0xa   :  { %2722 = shalt.err (!%p2719_p2)
}
   0xb   :  { %s2723_s12 = scalar_lea.vmem %s34_s25, 256  ;;  %p2728_p4 = scmp.lt.s32.totalorder %s34_s25, %s34_s25 }
   0xc   :  { %p2724_p3 = scmp.ne.s32.totalorder %s34_s25, %s2723_s12  ;;  %p2729_p5 = scmp.lt.s32.totalorder %s2723_s12, %s2723_s12 }
   0xe   :  { %p2730_p6 = por %p2729_p5, %p2728_p4 }
  0x10   :  { %p2731_p7 = pnand %p2730_p6, %p2724_p3 }
  0x12   :  { %2734 = shalt.err (!%p2731_p7)
}
  0x13   :  { %s2855_s13 = smov 128   ;;  %s2856_s14 = smov 8  }
  0x14   :  { %39 = dma.hbm_to_vmem [thread:$0]  %s3290_s1, 256, %s34_s25, [#allocation8], %s2855_s13, %s2855_s13, %s2856_s14  }
  0x15   :  { %s2735_s19 = scalar_lea.hbm %s3293_s4, 512 }
  0x16   :  { %p2736_p8 = scmp.ne.s32.totalorder %s3293_s4, %s2735_s19  ;;  %p2739_p9 = scmp.lt.u32.totalorder %s2735_s19, %s3293_s4 }
  0x18   :  { %p2741_p10 = pnand %p2739_p9, %p2736_p8 }
  0x1a   :  { %2744 = shalt.err (!%p2741_p10)
}
  0x1b   :  { %s2745_s24 = scalar_lea.vmem %s2906_s27, 512  ;;  %p2750_p12 = scmp.lt.s32.totalorder %s2906_s27, %s2906_s27 }
  0x1c   :  { %p2746_p11 = scmp.ne.s32.totalorder %s2906_s27, %s2745_s24  ;;  %p2751_p13 = scmp.lt.s32.totalorder %s2745_s24, %s2745_s24 }
  0x1e   :  { %p2752_p0 = por %p2751_p13, %p2750_p12 }
  0x20   :  { %p2753_p1 = pnand %p2752_p0, %p2746_p11 }
  0x22   :  { %2756 = shalt.err (!%p2753_p1)
}
  0x23   :  { %65 = dma.hbm_to_vmem [thread:$0]  %s3293_s4, 512, %s2906_s27, [#allocation11], %s2855_s13, %s2855_s13, %s2856_s14  }
  0x24   :  { %s2857_s26 = smov [#allocation4]   ;;  %s2858_s29 = smov [#allocation9]  }
  0x25   :  { %s21_s28 = sshll.u32 %s2857_s26, 4  ;;  %s45_s30 = sshll.u32 %s2858_s29, 4  ;;  %s22_s28 = int_to_ptr.vmem [resolvable:$true] %s21_s28  ;;  %s2943_s30 = int_to_ptr.vmem [resolvable:$true] %s45_s30 }
  0x26   :  { %s2757_s10 = scalar_lea.hbm %s3289_s0, 1024 }
  0x27   :  { %p2758_p2 = scmp.ne.s32.totalorder %s3289_s0, %s2757_s10  ;;  %p2761_p3 = scmp.lt.u32.totalorder %s2757_s10, %s3289_s0 }
  0x29   :  { %p2763_p4 = pnand %p2761_p3, %p2758_p2 }
  0x2b   :  { %2766 = shalt.err (!%p2763_p4)
}
  0x2c   :  { %s2767_s4 = scalar_lea.vmem %s22_s28, 1024  ;;  %p2772_p6 = scmp.lt.s32.totalorder %s22_s28, %s22_s28 }
  0x2d   :  { %p2768_p5 = scmp.ne.s32.totalorder %s22_s28, %s2767_s4  ;;  %p2773_p7 = scmp.lt.s32.totalorder %s2767_s4, %s2767_s4 }
  0x2f   :  { %p2774_p8 = por %p2773_p7, %p2772_p6 }
  0x31   :  { %p2775_p9 = pnand %p2774_p8, %p2768_p5 }
  0x33   :  { %2778 = shalt.err (!%p2775_p9)
}
  0x34   :  { %27 = dma.hbm_to_vmem [thread:$0]  %s3289_s0, 1024, %s22_s28, [#allocation5], %s2855_s13, %s2855_s13, %s2856_s14  }
  0x35   :  { %s2779_s20 = scalar_lea.hbm %s3291_s2, 512 }
  0x36   :  { %p2780_p10 = scmp.ne.s32.totalorder %s3291_s2, %s2779_s20  ;;  %p2783_p11 = scmp.lt.u32.totalorder %s2779_s20, %s3291_s2 }
  0x38   :  { %p2785_p12 = pnand %p2783_p11, %p2780_p10 }
  0x3a   :  { %2788 = shalt.err (!%p2785_p12)
}
  0x3b   :  { %s2789_s1 = scalar_lea.vmem %s2943_s30, 512  ;;  %p2794_p0 = scmp.lt.s32.totalorder %s2943_s30, %s2943_s30 }
  0x3c   :  { %p2790_p13 = scmp.ne.s32.totalorder %s2943_s30, %s2789_s1  ;;  %p2795_p1 = scmp.lt.s32.totalorder %s2789_s1, %s2789_s1 }
  0x3e   :  { %p2796_p2 = por %p2795_p1, %p2794_p0 }
  0x40   :  { %p2797_p3 = pnand %p2796_p2, %p2790_p13 }
  0x42   :  { %2800 = shalt.err (!%p2797_p3)
}
  0x43   :  { %51 = dma.hbm_to_vmem [thread:$0]  %s3291_s2, 512, %s2943_s30, [#allocation8], %s2855_s13, %s2855_s13, %s2856_s14  }
  0x44   :  { %s2859_s26 = smov [#allocation12]   ;;  %s2801_s9 = scalar_lea.hbm %s3294_s5, 512 }
  0x45   :  { %s71_s28 = sshll.u32 %s2859_s26, 4  ;;  %p2802_p4 = scmp.ne.s32.totalorder %s3294_s5, %s2801_s9  ;;  %s72_s28 = int_to_ptr.vmem [resolvable:$true] %s71_s28 }
  0x46   :  { %p2805_p5 = scmp.lt.u32.totalorder %s2801_s9, %s3294_s5 }
  0x48   :  { %p2807_p6 = pnand %p2805_p5, %p2802_p4 }
  0x4a   :  { %2810 = shalt.err (!%p2807_p6)
}
  0x4b   :  { %s2811_s16 = scalar_lea.vmem %s72_s28, 512  ;;  %p2816_p8 = scmp.lt.s32.totalorder %s72_s28, %s72_s28 }
  0x4c   :  { %p2812_p7 = scmp.ne.s32.totalorder %s72_s28, %s2811_s16  ;;  %p2817_p9 = scmp.lt.s32.totalorder %s2811_s16, %s2811_s16 }
  0x4e   :  { %p2818_p10 = por %p2817_p9, %p2816_p8 }
  0x50   :  { %p2819_p11 = pnand %p2818_p10, %p2812_p7 }
  0x52   :  { %2822 = shalt.err (!%p2819_p11)
}
  0x53   :  { %77 = dma.hbm_to_vmem [thread:$0]  %s3294_s5, 512, %s72_s28, [#allocation11], %s2855_s13, %s2855_s13, %s2856_s14  }
  0x54   :  { %2845 = dma.done.wait [#allocation5], 1024  }
  0x55   :  { %2846 = vsyncadd [#allocation5], 4294966272 }
  0x56   :  { %2847 = dma.done.wait [#allocation8], 768  }
  0x57   :  { %2848 = vsyncadd [#allocation8], 4294966528 }
  0x58   :  { %2849 = dma.done.wait [#allocation11], 1024  }
  0x59   :  { %2850 = vsyncadd [#allocation11], 4294966272  ;;  %v2860_v0 = vmov 0.0|0.0   ;;  %vm2861_vm0 = vmmov 0   ;;  %v2862_v1 = vmov 0.0   ;;  %vm116_vm1 = vcmask 130048  }
  0x5a   :  { %2468 = vmatprep.subr.bf16.mxu1 %v2860_v0  ;;  %2276 = vmatprep.mubr.msk.f32.mxu1 %vm2861_vm0, %v2862_v1  ;;  %v103_v2 = vld [vmem:[#allocation7] sm:$0xff]  ;;  %v104_v3 = vld [vmem:[#allocation7 + $0x8] sm:$0xff]  ;;  %v105_v4 = vld [vmem:[#allocation9] sm:$0xff]  ;;  %s2863_s27 = smov 64   ;;  %vm255_vm2 = vcmask 261120  }
  0x5b   :  { %v2464_v5 = vpack.c.bf16 %v104_v3, %v103_v2  ;;  %v106_v6 = vld [vmem:[#allocation9 + $0x8] sm:$0xff]  ;;  %v95_v7 = vld [vmem:[#allocation4] sm:$0xff]  ;;  %v108_v10 = vld [vmem:[#allocation9 + $0x18] sm:$0xff] }
  0x5c   :  { %v2998_v8 = vpack.c.bf16 %v106_v6, %v105_v4  ;;  %2256 = vmatprep.mubr.msk.f32.mxu0 %vm116_vm1, %v95_v7  ;;  %v107_v9 = vld [vmem:[#allocation9 + $0x10] sm:$0xff]  ;;  %v96_v11 = vld [vmem:[#allocation4 + $0x8] sm:$0xff]  ;;  %v97_v48 = vld [vmem:[#allocation4 + $0x10] sm:$0xff] }
  0x5d   :  { %2465 = vmatprep.subr.bf16.mxu0 %v2464_v5  ;;  %v3002_v12 = vpack.c.bf16 %v108_v10, %v107_v9  ;;  %v3023_v13 = vld [vmem:[%s3292_s3] ss:$0 sm:$0xff]  ;;  %s2864_s3 = smov 32   ;;  %v98_v49 = vld [vmem:[#allocation4 + $0x18] sm:$0xff]  ;;  %v100_v51 = vld [vmem:[#allocation4 + $0x28] sm:$0xff] }
  0x5e   :  { %2470 = vmatpush3.bf16.msra.mxu1 %v2998_v8  ;;  %2467 = vmatpush3.bf16.msra.mxu0 %v2464_v5  ;;  %v99_v50 = vld [vmem:[#allocation4 + $0x20] sm:$0xff]  ;;  %v101_v52 = vld [vmem:[#allocation4 + $0x30] sm:$0xff]  ;;  %v102_v53 = vld [vmem:[#allocation4 + $0x38] sm:$0xff] }
  0x5f   :  { %2471 = vmatprep.subr.bf16.mxu1 %v2860_v0  ;;  %2480 = vmatprep.subr.bf16.mxu0 %v2860_v0 }
  0x61   :  { %2257 = vmatmul.mubr.msk.f32.vlgmr.msra.gmra.mrb[0].mxu0 %vm116_vm1, %v96_v11 }
  0x62   :  { %2473 = vmatpush3.bf16.msra.mxu1 %v3002_v12  ;;  %2482 = vmatpush3.bf16.msra.mxu0 %v2998_v8 }
  0x63   :  { %2474 = vmatprep.subr.bf16.mxu1 %v2860_v0  ;;  %2483 = vmatprep.subr.bf16.mxu0 %v2860_v0 }
  0x64   :  { %2259 = vmatprep.mubr.msk.f32.mxu0 %vm116_vm1, %v97_v48 }
  0x65   :  { %2277 = vmatmul.mubr.f32.vlgmr.msra.gmra.mrb[0].mxu1 %v2862_v1  ;;  %2260 = vmatmul.mubr.msk.f32.gmra.mrb[2].mxu0 %vm116_vm1, %v98_v49 }
  0x66   :  { %2476 = vmatpush3.bf16.msra.mxu1 %v2998_v8  ;;  %2287 = vmatprep.mubr.msk.f32.mxu1 %vm2861_vm0, %v2862_v1 }
  0x67   :  { %2477 = vmatprep.subr.bf16.mxu1 %v2860_v0  ;;  %2485 = vmatpush3.bf16.msra.mxu0 %v3002_v12 }
  0x68   :  { %2492 = vmatprep.subr.bf16.mxu0 %v2860_v0  ;;  %2262 = vmatprep.mubr.msk.f32.mxu0 %vm116_vm1, %v99_v50 }
  0x69   :  { %2263 = vmatmul.mubr.msk.f32.gmra.mrb[4].mxu0 %vm116_vm1, %v100_v51 }
  0x6a   :  { %2479 = vmatpush3.bf16.msra.mxu1 %v3002_v12  ;;  %2265 = vmatprep.mubr.msk.f32.mxu0 %vm116_vm1, %v101_v52 }
  0x6b   :  { %2486 = vmatprep.subr.bf16.mxu1 %v2860_v0 }
  0x6d   :  { %2266 = vmatmul.mubr.msk.f32.gmra.mrb[6].mxu0 %vm116_vm1, %v102_v53 }
  0x6e   :  { %2298 = vmatprep.mubr.msk.f32.mxu0 %vm2861_vm0, %v2862_v1 }
 0x134   :  { %v2258_v14 = vpop.f32.mrb[0].mxu0 }
 0x135   :  { %v207_v15 = vpop.f32.mrb[1].mxu0  ;;  %v213_v34 = vadd.f32 %v2258_v14, %v3023_v13 }
 0x136   :  { %v208_v16 = vadd.f32 %v3023_v13, %v207_v15 }
 0x138   :  { %v325_v17 = vpop.f32.mrb[0].mxu1  ;;  %v2261_v57 = vpop.f32.mrb[2].mxu0 }
 0x139   :  { %v329_v18 = vadd.f32 %v325_v17, %v208_v16  ;;  %v2278_v19 = vpop.f32.mrb[1].mxu1  ;;  %v217_v58 = vpop.f32.mrb[3].mxu0 }
 0x13a   :  { %v218_v2 = vadd.f32 %v3023_v13, %v217_v58 }
 0x13b   :  { %2585 = vtanh.f32 %v329_v18  ;;  %v2111_v21 = vmul.f32 -1.442695, %v329_v18 }
 0x13c   :  { %v3051_v59 = vpop.f32.mrb[4].mxu0 }
 0x13d   :  { %2587 = vpow2.f32 %v2111_v21  ;;  %v3053_v60 = vpop.f32.mrb[5].mxu0 }
 0x140   :  { %v3055_v61 = vpop.f32.mrb[6].mxu0 }
 0x141   :  { %v3057_v62 = vpop.f32.mrb[7].mxu0 }
 0x145   :  { %v2586_v20 = vpop.eup %2585 }
 0x146   :  { %339 = vrot.lane.b32.xlu0 %v2586_v20, %s2863_s27 }
 0x147   :  { %v2588_v22 = vpop.eup %2587 }
 0x148   :  { %v333_v23 = vadd.f32 1.0, %v2588_v22 }
 0x14a   :  { %2589 = vrcp.f32 %v333_v23  ;;  %v223_v23 = vadd.f32 %v2261_v57, %v3023_v13 }
 0x154   :  { %v2590_v24 = vpop.eup %2589 }
 0x155   :  { %v337_v27 = vmul.f32 0.0, %v2590_v24 }
 0x1b8   :  { %v340_v25 = vpop.permute.xlu0 %339 }
 0x1b9   :  { %v342_v26 = vmul.f32 %v2590_v24, %v340_v25 }
 0x1bb   :  { %344 = vrot.lane.b32.xlu0 %v342_v26, %s2864_s3 }
 0x22d   :  { %v345_v28 = vpop.permute.xlu0 %344 }
 0x22e   :  { %v347_v29 = vadd.f32 %v345_v28, %v337_v27 }
 0x230   :  { %2591 = vtanh.f32 %v347_v29 }
 0x23a   :  { %v2592_v30 = vpop.eup %2591 }
 0x23b   :  { %350 = vrot.lane.b32.xlu1 %v2592_v30, %s2863_s27 }
 0x2ad   :  { %v351_v31 = vpop.permute.xlu1 %350 }
 0x2ae   :  { %v353_v32 = vmul.f32 %v2590_v24, %v351_v31 }
 0x2b0   :  { %355 = vrot.lane.b32.xlu1 %v353_v32, %s2864_s3 }
 0x322   :  { %v356_v33 = vpop.permute.xlu1 %355 }
 0x323   :  { %358 = vst.msk [vmem:[#allocation2] sm:$0xff] %vm255_vm2, %v356_v33  ;;  %2288 = vmatmul.mubr.msk.f32.vlgmr.msra.gmra.mrb[2].mxu1 %vm255_vm2, %v356_v33 }
 0x324   :  { %2488 = vmatpush3.bf16.msra.mxu1 %v2998_v8  ;;  %2309 = vmatprep.mubr.msk.f32.mxu1 %vm2861_vm0, %v2862_v1 }
 0x325   :  { %2489 = vmatprep.subr.bf16.mxu1 %v2860_v0 }
 0x328   :  { %2491 = vmatpush3.bf16.msra.mxu1 %v3002_v12 }
 0x329   :  { %2498 = vmatprep.subr.bf16.mxu1 %v2860_v0 }
 0x3f6   :  { %v429_v35 = vpop.f32.mrb[2].mxu1 }
 0x3f7   :  { %v433_v36 = vadd.f32 %v429_v35, %v213_v34  ;;  %v2289_v37 = vpop.f32.mrb[3].mxu1 }
 0x3f9   :  { %2593 = vtanh.f32 %v433_v36  ;;  %v2113_v39 = vmul.f32 -1.442695, %v433_v36 }
 0x3fb   :  { %2595 = vpow2.f32 %v2113_v39 }
 0x403   :  { %v2594_v38 = vpop.eup %2593 }
 0x404   :  { %443 = vrot.lane.b32.xlu0 %v2594_v38, %s2863_s27 }
 0x405   :  { %v2596_v40 = vpop.eup %2595 }
 0x406   :  { %v437_v41 = vadd.f32 1.0, %v2596_v40 }
 0x408   :  { %2597 = vrcp.f32 %v437_v41  ;;  %v228_v41 = vadd.f32 %v3023_v13, %v3053_v60  ;;  %v233_v60 = vadd.f32 %v3051_v59, %v3023_v13 }
 0x412   :  { %v2598_v42 = vpop.eup %2597 }
 0x413   :  { %v441_v45 = vmul.f32 %v2598_v42, %v347_v29 }
 0x476   :  { %v444_v43 = vpop.permute.xlu0 %443 }
 0x477   :  { %v446_v44 = vmul.f32 %v2598_v42, %v444_v43 }
 0x479   :  { %448 = vrot.lane.b32.xlu1 %v446_v44, %s2864_s3 }
 0x4eb   :  { %v449_v46 = vpop.permute.xlu1 %448 }
 0x4ec   :  { %v451_v47 = vadd.f32 %v449_v46, %v441_v45 }
 0x4ee   :  { %2599 = vtanh.f32 %v451_v47 }
 0x4f8   :  { %v2600_v54 = vpop.eup %2599 }
 0x4f9   :  { %454 = vrot.lane.b32.xlu0 %v2600_v54, %s2863_s27 }
 0x56b   :  { %v455_v55 = vpop.permute.xlu0 %454 }
 0x56c   :  { %v457_v56 = vmul.f32 %v2598_v42, %v455_v55 }
 0x56e   :  { %459 = vrot.lane.b32.xlu1 %v457_v56, %s2864_s3 }
 0x5e0   :  { %v460_v63 = vpop.permute.xlu1 %459 }
 0x5e1   :  { %463 = vst.msk [vmem:[#allocation2 + $0x8] sm:$0xff] %vm255_vm2, %v460_v63  ;;  %2299 = vmatmul.mubr.msk.f32.vlgmr.msra.gmra.mrb[8].mxu0 %vm255_vm2, %v460_v63 }
 0x5e2   :  { %2494 = vmatpush3.bf16.msra.mxu0 %v2998_v8  ;;  %2320 = vmatprep.mubr.msk.f32.mxu0 %vm2861_vm0, %v2862_v1 }
 0x5e3   :  { %2495 = vmatprep.subr.bf16.mxu0 %v2860_v0 }
 0x5e6   :  { %2497 = vmatpush3.bf16.msra.mxu0 %v3002_v12 }
 0x5e7   :  { %2504 = vmatprep.subr.bf16.mxu0 %v2860_v0 }
 0x6b4   :  { %v534_v3 = vpop.f32.mrb[8].mxu0 }
 0x6b5   :  { %v538_v4 = vadd.f32 %v534_v3, %v218_v2  ;;  %v2300_v5 = vpop.f32.mrb[9].mxu0 }
 0x6b7   :  { %2601 = vtanh.f32 %v538_v4  ;;  %v2115_v7 = vmul.f32 -1.442695, %v538_v4 }
 0x6b9   :  { %2603 = vpow2.f32 %v2115_v7 }
 0x6c1   :  { %v2602_v6 = vpop.eup %2601 }
 0x6c2   :  { %548 = vrot.lane.b32.xlu0 %v2602_v6, %s2863_s27 }
 0x6c3   :  { %v2604_v9 = vpop.eup %2603 }
 0x6c4   :  { %v542_v10 = vadd.f32 1.0, %v2604_v9 }
 0x6c6   :  { %2605 = vrcp.f32 %v542_v10 }
 0x6d0   :  { %v2606_v11 = vpop.eup %2605 }
 0x6d1   :  { %v546_v16 = vmul.f32 %v2606_v11, %v451_v47 }
 0x734   :  { %v549_v14 = vpop.permute.xlu0 %548 }
 0x735   :  { %v551_v15 = vmul.f32 %v2606_v11, %v549_v14  ;;  %v1102_v14 = vld [vmem:[#allocation10] sm:$0xff] }
 0x737   :  { %553 = vrot.lane.b32.xlu1 %v551_v15, %s2864_s3  ;;  %v1103_v15 = vld [vmem:[#allocation10 + $0x8] sm:$0xff] }
 0x7a9   :  { %v554_v17 = vpop.permute.xlu1 %553 }
 0x7aa   :  { %v556_v18 = vadd.f32 %v554_v17, %v546_v16  ;;  %v2516_v16 = vpack.c.bf16 %v1103_v15, %v1102_v14 }
 0x7ac   :  { %2607 = vtanh.f32 %v556_v18 }
 0x7b6   :  { %v2608_v19 = vpop.eup %2607 }
 0x7b7   :  { %559 = vrot.lane.b32.xlu0 %v2608_v19, %s2863_s27 }
 0x829   :  { %v560_v20 = vpop.permute.xlu0 %559 }
 0x82a   :  { %v562_v21 = vmul.f32 %v2606_v11, %v560_v20  ;;  %v1104_v20 = vld [vmem:[#allocation10 + $0x10] sm:$0xff] }
 0x82c   :  { %564 = vrot.lane.b32.xlu1 %v562_v21, %s2864_s3  ;;  %v1105_v21 = vld [vmem:[#allocation10 + $0x18] sm:$0xff] }
 0x89e   :  { %v565_v22 = vpop.permute.xlu1 %564 }
 0x89f   :  { %568 = vst.msk [vmem:[#allocation2 + $0x10] sm:$0xff] %vm255_vm2, %v565_v22  ;;  %2310 = vmatmul.mubr.msk.f32.vlgmr.msra.gmra.mrb[4].mxu1 %vm255_vm2, %v565_v22  ;;  %v2520_v22 = vpack.c.bf16 %v1105_v21, %v1104_v20 }
 0x8a0   :  { %2500 = vmatpush3.bf16.msra.mxu1 %v2998_v8  ;;  %2331 = vmatprep.mubr.msk.f32.mxu1 %vm2861_vm0, %v2862_v1 }
 0x8a1   :  { %2501 = vmatprep.subr.bf16.mxu1 %v2860_v0 }
 0x8a4   :  { %2503 = vmatpush3.bf16.msra.mxu1 %v3002_v12 }
 0x8a5   :  { %2510 = vmatprep.subr.bf16.mxu1 %v2860_v0 }
 0x972   :  { %v639_v24 = vpop.f32.mrb[4].mxu1 }
 0x973   :  { %v643_v25 = vadd.f32 %v639_v24, %v223_v23  ;;  %v2311_v26 = vpop.f32.mrb[5].mxu1  ;;  %v1094_v24 = vld [vmem:[#allocation2] sm:$0xff] }
 0x974   :  { %v1096_v26 = vld [vmem:[#allocation2 + $0x10] sm:$0xff] }
 0x975   :  { %2609 = vtanh.f32 %v643_v25  ;;  %v2117_v28 = vmul.f32 -1.442695, %v643_v25  ;;  %v1095_v25 = vld [vmem:[#allocation2 + $0x8] sm:$0xff] }
 0x977   :  { %2611 = vpow2.f32 %v2117_v28 }
 0x97f   :  { %v2610_v27 = vpop.eup %2609 }
 0x980   :  { %653 = vrot.lane.b32.xlu0 %v2610_v27, %s2863_s27 }
 0x981   :  { %v2612_v29 = vpop.eup %2611 }
 0x982   :  { %v647_v30 = vadd.f32 1.0, %v2612_v29 }
 0x984   :  { %2613 = vrcp.f32 %v647_v30  ;;  %v238_v30 = vadd.f32 %v3023_v13, %v3057_v62 }
 0x98e   :  { %v2614_v31 = vpop.eup %2613 }
 0x98f   :  { %v651_v34 = vmul.f32 %v2614_v31, %v556_v18 }
 0x9f2   :  { %v654_v32 = vpop.permute.xlu0 %653 }
 0x9f3   :  { %v656_v33 = vmul.f32 %v2614_v31, %v654_v32 }
 0x9f5   :  { %658 = vrot.lane.b32.xlu1 %v656_v33, %s2864_s3 }
 0xa67   :  { %v659_v35 = vpop.permute.xlu1 %658 }
 0xa68   :  { %v661_v36 = vadd.f32 %v659_v35, %v651_v34 }
 0xa6a   :  { %2615 = vtanh.f32 %v661_v36 }
 0xa74   :  { %v2616_v37 = vpop.eup %2615 }
 0xa75   :  { %664 = vrot.lane.b32.xlu0 %v2616_v37, %s2863_s27 }
 0xae7   :  { %v665_v38 = vpop.permute.xlu0 %664 }
 0xae8   :  { %v667_v39 = vmul.f32 %v2614_v31, %v665_v38 }
 0xaea   :  { %669 = vrot.lane.b32.xlu1 %v667_v39, %s2864_s3 }
 0xb5c   :  { %v670_v40 = vpop.permute.xlu1 %669 }
 0xb5d   :  { %673 = vst.msk [vmem:[#allocation2 + $0x18] sm:$0xff] %vm255_vm2, %v670_v40  ;;  %2321 = vmatmul.mubr.msk.f32.vlgmr.msra.gmra.mrb[10].mxu0 %vm255_vm2, %v670_v40 }
 0xb5e   :  { %2506 = vmatpush3.bf16.msra.mxu0 %v2998_v8  ;;  %2342 = vmatprep.mubr.msk.f32.mxu0 %vm2861_vm0, %v2862_v1 }
 0xb5f   :  { %2507 = vmatprep.subr.bf16.mxu0 %v2860_v0 }
 0xb62   :  { %2509 = vmatpush3.bf16.msra.mxu0 %v3002_v12 }
 0xb63   :  { %2517 = vmatprep.subr.bf16.mxu0 %v2516_v16 }
 0xb64   :  { %v1097_v27 = vld [vmem:[#allocation2 + $0x18] sm:$0xff] }
 0xc30   :  { %v744_v42 = vpop.f32.mrb[10].mxu0 }
 0xc31   :  { %v748_v43 = vadd.f32 %v744_v42, %v228_v41  ;;  %v2322_v44 = vpop.f32.mrb[11].mxu0 }
 0xc33   :  { %2617 = vtanh.f32 %v748_v43  ;;  %v2119_v46 = vmul.f32 -1.442695, %v748_v43 }
 0xc35   :  { %2619 = vpow2.f32 %v2119_v46 }
 0xc3d   :  { %v2618_v45 = vpop.eup %2617 }
 0xc3e   :  { %758 = vrot.lane.b32.xlu0 %v2618_v45, %s2863_s27 }
 0xc3f   :  { %v2620_v47 = vpop.eup %2619 }
 0xc40   :  { %v752_v48 = vadd.f32 1.0, %v2620_v47 }
 0xc42   :  { %2621 = vrcp.f32 %v752_v48 }
 0xc4c   :  { %v2622_v49 = vpop.eup %2621 }
 0xc4d   :  { %v756_v52 = vmul.f32 %v2622_v49, %v661_v36 }
 0xcb0   :  { %v759_v50 = vpop.permute.xlu0 %758 }
 0xcb1   :  { %v761_v51 = vmul.f32 %v2622_v49, %v759_v50  ;;  %v1106_v50 = vld [vmem:[#allocation12] sm:$0xff] }
 0xcb3   :  { %763 = vrot.lane.b32.xlu1 %v761_v51, %s2864_s3  ;;  %v1107_v51 = vld [vmem:[#allocation12 + $0x8] sm:$0xff] }
 0xd25   :  { %v764_v53 = vpop.permute.xlu1 %763 }
 0xd26   :  { %v766_v54 = vadd.f32 %v764_v53, %v756_v52  ;;  %v3139_v52 = vpack.c.bf16 %v1107_v51, %v1106_v50  ;;  %v1108_v53 = vld [vmem:[#allocation12 + $0x10] sm:$0xff] }
 0xd28   :  { %2623 = vtanh.f32 %v766_v54 }
 0xd32   :  { %v2624_v55 = vpop.eup %2623 }
 0xd33   :  { %769 = vrot.lane.b32.xlu0 %v2624_v55, %s2863_s27 }
 0xda5   :  { %v770_v56 = vpop.permute.xlu0 %769 }
 0xda6   :  { %v772_v57 = vmul.f32 %v2622_v49, %v770_v56 }
 0xda8   :  { %774 = vrot.lane.b32.xlu1 %v772_v57, %s2864_s3 }
 0xe1a   :  { %v775_v58 = vpop.permute.xlu1 %774 }
 0xe1b   :  { %778 = vst.msk [vmem:[#allocation2 + $0x20] sm:$0xff] %vm255_vm2, %v775_v58  ;;  %2332 = vmatmul.mubr.msk.f32.vlgmr.msra.gmra.mrb[6].mxu1 %vm255_vm2, %v775_v58 }
 0xe1c   :  { %2512 = vmatpush3.bf16.msra.mxu1 %v2998_v8  ;;  %2353 = vmatprep.mubr.msk.f32.mxu1 %vm2861_vm0, %v2862_v1 }
 0xe1d   :  { %2513 = vmatprep.subr.bf16.mxu1 %v2860_v0 }
 0xe20   :  { %2515 = vmatpush3.bf16.msra.mxu1 %v3002_v12 }
 0xe21   :  { %2524 = vmatprep.subr.bf16.mxu1 %v2860_v0 }
 0xe22   :  { %v1098_v28 = vld [vmem:[#allocation2 + $0x20] sm:$0xff] }
 0xeee   :  { %v849_v63 = vpop.f32.mrb[6].mxu1 }
 0xeef   :  { %v853_v2 = vadd.f32 %v849_v63, %v233_v60  ;;  %v2333_v3 = vpop.f32.mrb[7].mxu1  ;;  %v243_v63 = vadd.f32 %v3055_v61, %v3023_v13 }
 0xef1   :  { %2625 = vtanh.f32 %v853_v2  ;;  %v2121_v8 = vmul.f32 -1.442695, %v853_v2 }
 0xef3   :  { %2627 = vpow2.f32 %v2121_v8  ;;  %v3169_v8 = vld [vmem:[%s3295_s6] ss:$0 sm:$0xff]  ;;  %s2865_s6 = smov [#allocation13]  }
 0xef4   :  { %s2088_s19 = sshll.u32 %s2865_s6, 4  ;;  %s2089_s19 = int_to_ptr.vmem [resolvable:$true] %s2088_s19 }
 0xef5   :  { %s2823_s20 = scalar_lea.vmem %s2089_s19, 1024  ;;  %p2828_p13 = scmp.lt.s32.totalorder %s2089_s19, %s2089_s19 }
 0xef6   :  { %p2824_p12 = scmp.ne.s32.totalorder %s2089_s19, %s2823_s20  ;;  %p2829_p0 = scmp.lt.s32.totalorder %s2823_s20, %s2823_s20 }
 0xef8   :  { %p2830_p1 = por %p2829_p0, %p2828_p13 }
 0xefa   :  { %p2831_p2 = pnand %p2830_p1, %p2824_p12 }
 0xefb   :  { %v2626_v4 = vpop.eup %2625 }
 0xefc   :  { %863 = vrot.lane.b32.xlu0 %v2626_v4, %s2863_s27 }
 0xefd   :  { %v2628_v5 = vpop.eup %2627 }
 0xefe   :  { %v857_v6 = vadd.f32 1.0, %v2628_v5 }
 0xf00   :  { %2629 = vrcp.f32 %v857_v6 }
 0xf0a   :  { %v2630_v7 = vpop.eup %2629 }
 0xf0b   :  { %v861_v10 = vmul.f32 %v2630_v7, %v766_v54  ;;  %v1109_v54 = vld [vmem:[#allocation12 + $0x18] sm:$0xff] }
 0xf0c   :  { %v3143_v55 = vpack.c.bf16 %v1109_v54, %v1108_v53 }
 0xf6e   :  { %v864_v9 = vpop.permute.xlu0 %863 }
 0xf6f   :  { %v866_v12 = vmul.f32 %v2630_v7, %v864_v9 }
 0xf71   :  { %868 = vrot.lane.b32.xlu1 %v866_v12, %s2864_s3 }
 0xfe3   :  { %v869_v11 = vpop.permute.xlu1 %868 }
 0xfe4   :  { %v871_v59 = vadd.f32 %v869_v11, %v861_v10 }
 0xfe6   :  { %2631 = vtanh.f32 %v871_v59 }
 0xff0   :  { %v2632_v17 = vpop.eup %2631 }
 0xff1   :  { %874 = vrot.lane.b32.xlu0 %v2632_v17, %s2863_s27 }
0x1063   :  { %v875_v18 = vpop.permute.xlu0 %874 }
0x1064   :  { %v877_v19 = vmul.f32 %v2630_v7, %v875_v18 }
0x1066   :  { %879 = vrot.lane.b32.xlu1 %v877_v19, %s2864_s3 }
0x10d8   :  { %v880_v23 = vpop.permute.xlu1 %879 }
0x10d9   :  { %883 = vst.msk [vmem:[#allocation2 + $0x28] sm:$0xff] %vm255_vm2, %v880_v23  ;;  %2343 = vmatmul.mubr.msk.f32.vlgmr.msra.gmra.mrb[12].mxu0 %vm255_vm2, %v880_v23 }
0x10da   :  { %2519 = vmatpush3.bf16.msra.mxu0 %v2516_v16  ;;  %2364 = vmatprep.mubr.msk.f32.mxu0 %vm255_vm2, %v1094_v24 }
0x10db   :  { %2521 = vmatprep.subr.bf16.mxu0 %v2520_v22 }
0x10de   :  { %2523 = vmatpush3.bf16.msra.mxu0 %v2520_v22 }
0x10df   :  { %2536 = vmatprep.subr.bf16.mxu0 %v2860_v0 }
0x10e0   :  { %v1099_v29 = vld [vmem:[#allocation2 + $0x28] sm:$0xff] }
0x10e1   :  { %2365 = vmatmul.mubr.msk.f32.vlgmr.msra.gmra.mrb[14].mxu0 %vm255_vm2, %v1095_v25 }
0x10e2   :  { %2367 = vmatprep.mubr.msk.f32.mxu0 %vm255_vm2, %v1096_v26  ;;  %2538 = vmatpush3.bf16.msra.mxu0 %v3139_v52 }
0x10e3   :  { %2539 = vmatprep.subr.bf16.mxu0 %v2860_v0 }
0x10e5   :  { %2368 = vmatmul.mubr.msk.f32.gmra.mrb[16].mxu0 %vm255_vm2, %v1097_v27 }
0x10e6   :  { %2370 = vmatprep.mubr.msk.f32.mxu0 %vm255_vm2, %v1098_v28  ;;  %2541 = vmatpush3.bf16.msra.mxu0 %v3143_v55 }
0x10e7   :  { %2548 = vmatprep.subr.bf16.mxu0 %v2860_v0 }
0x10e9   :  { %2371 = vmatmul.mubr.msk.f32.gmra.mrb[18].mxu0 %vm255_vm2, %v1099_v29 }
0x11ac   :  { %v954_v31 = vpop.f32.mrb[12].mxu0 }
0x11ad   :  { %v958_v32 = vadd.f32 %v954_v31, %v238_v30  ;;  %v2344_v33 = vpop.f32.mrb[13].mxu0 }
0x11af   :  { %2633 = vtanh.f32 %v958_v32  ;;  %v2123_v41 = vmul.f32 -1.442695, %v958_v32 }
0x11b1   :  { %2635 = vpow2.f32 %v2123_v41 }
0x11b4   :  { %v3123_v34 = vpop.f32.mrb[14].mxu0 }
0x11b5   :  { %v1207_v35 = vpop.f32.mrb[15].mxu0 }
0x11b6   :  { %v1208_v5 = vadd.f32 %v3169_v8, %v1207_v35 }
0x11b8   :  { %v3125_v36 = vpop.f32.mrb[16].mxu0 }
0x11b9   :  { %v2634_v37 = vpop.eup %2633  ;;  %v3127_v38 = vpop.f32.mrb[17].mxu0 }
0x11ba   :  { %968 = vrot.lane.b32.xlu0 %v2634_v37, %s2863_s27  ;;  %v1213_v37 = vadd.f32 %v3123_v34, %v3169_v8 }
0x11bb   :  { %v2636_v62 = vpop.eup %2635 }
0x11bc   :  { %v3130_v39 = vpop.f32.mrb[18].mxu0  ;;  %v962_v42 = vadd.f32 1.0, %v2636_v62 }
0x11bd   :  { %v3132_v40 = vpop.f32.mrb[19].mxu0 }
0x11be   :  { %2637 = vrcp.f32 %v962_v42 }
0x11c8   :  { %v2638_v43 = vpop.eup %2637 }
0x11c9   :  { %v966_v46 = vmul.f32 %v2638_v43, %v871_v59 }
0x122c   :  { %v969_v44 = vpop.permute.xlu0 %968 }
0x122d   :  { %v971_v45 = vmul.f32 %v2638_v43, %v969_v44 }
0x122f   :  { %973 = vrot.lane.b32.xlu1 %v971_v45, %s2864_s3 }
0x12a1   :  { %v974_v47 = vpop.permute.xlu1 %973 }
0x12a2   :  { %v3135_v48 = vadd.f32 %v974_v47, %v966_v46 }
0x12a4   :  { %2639 = vtanh.f32 %v3135_v48 }
0x12ae   :  { %v2640_v49 = vpop.eup %2639 }
0x12af   :  { %979 = vrot.lane.b32.xlu0 %v2640_v49, %s2863_s27 }
0x1321   :  { %v980_v56 = vpop.permute.xlu0 %979 }
0x1322   :  { %v982_v57 = vmul.f32 %v2638_v43, %v980_v56 }
0x1324   :  { %984 = vrot.lane.b32.xlu1 %v982_v57, %s2864_s3 }
0x1396   :  { %v985_v58 = vpop.permute.xlu1 %984 }
0x1397   :  { %988 = vst.msk [vmem:[#allocation2 + $0x30] sm:$0xff] %vm255_vm2, %v985_v58  ;;  %2354 = vmatmul.mubr.msk.f32.vlgmr.msra.gmra.mrb[8].mxu1 %vm255_vm2, %v985_v58 }
0x1398   :  { %2526 = vmatpush3.bf16.msra.mxu1 %v3139_v52  ;;  %2384 = vmatprep.mubr.msk.f32.mxu1 %vm2861_vm0, %v2862_v1 }
0x1399   :  { %2527 = vmatprep.subr.bf16.mxu1 %v2860_v0 }
0x139c   :  { %2529 = vmatpush3.bf16.msra.mxu1 %v3143_v55 }
0x139d   :  { %2530 = vmatprep.subr.bf16.mxu1 %v2860_v0 }
0x139e   :  { %v1100_v60 = vld [vmem:[#allocation2 + $0x30] sm:$0xff] }
0x139f   :  { %2385 = vmatmul.mubr.f32.vlgmr.msra.gmra.mrb[10].mxu1 %v2862_v1  ;;  %2373 = vmatprep.mubr.msk.f32.mxu0 %vm255_vm2, %v1100_v60 }
0x13a0   :  { %2532 = vmatpush3.bf16.msra.mxu1 %v3139_v52  ;;  %2395 = vmatprep.mubr.msk.f32.mxu1 %vm2861_vm0, %v2862_v1 }
0x13a1   :  { %2533 = vmatprep.subr.bf16.mxu1 %v2860_v0 }
0x13a4   :  { %2535 = vmatpush3.bf16.msra.mxu1 %v3143_v55 }
0x13a5   :  { %2542 = vmatprep.subr.bf16.mxu1 %v2860_v0 }
0x146a   :  { %v1059_v2 = vpop.f32.mrb[8].mxu1 }
0x146b   :  { %v1063_v3 = vadd.f32 %v1059_v2, %v243_v63  ;;  %v2355_v4 = vpop.f32.mrb[9].mxu1 }
0x146d   :  { %v2125_v20 = vmul.f32 -1.442695, %v1063_v3 }
0x1472   :  { %v1321_v6 = vpop.f32.mrb[10].mxu1 }
0x1473   :  { %v1325_v7 = vadd.f32 %v1321_v6, %v1208_v5  ;;  %v2386_v9 = vpop.f32.mrb[11].mxu1 }
0x1475   :  { %2641 = vtanh.f32 %v1325_v7  ;;  %v2135_v10 = vmul.f32 -1.442695, %v1325_v7 }
0x1477   :  { %2643 = vpow2.f32 %v2135_v10 }
0x147f   :  { %v2642_v12 = vpop.eup %2641 }
0x1480   :  { %1335 = vrot.lane.b32.xlu0 %v2642_v12, %s2863_s27 }
0x1481   :  { %v2644_v13 = vpop.eup %2643 }
0x1482   :  { %v1329_v61 = vadd.f32 1.0, %v2644_v13 }
0x1484   :  { %2645 = vrcp.f32 %v1329_v61 }
0x148e   :  { %v2646_v11 = vpop.eup %2645 }
0x148f   :  { %v1333_v15 = vmul.f32 0.0, %v2646_v11 }
0x14f2   :  { %v1336_v59 = vpop.permute.xlu0 %1335 }
0x14f3   :  { %v1338_v14 = vmul.f32 %v2646_v11, %v1336_v59 }
0x14f5   :  { %1340 = vrot.lane.b32.xlu1 %v1338_v14, %s2864_s3 }
0x1567   :  { %v1341_v16 = vpop.permute.xlu1 %1340 }
0x1568   :  { %v1343_v17 = vadd.f32 %v1341_v16, %v1333_v15 }
0x156a   :  { %2647 = vtanh.f32 %v1343_v17 }
0x156b   :  { %2649 = vtanh.f32 %v1063_v3  ;;  %v1218_v3 = vadd.f32 %v3169_v8, %v3127_v38 }
0x156c   :  { %2651 = vpow2.f32 %v2125_v20 }
0x1574   :  { %v2648_v18 = vpop.eup %2647 }
0x1575   :  { %1346 = vrot.lane.b32.xlu0 %v2648_v18, %s2863_s27  ;;  %v2650_v19 = vpop.eup %2649 }
0x1576   :  { %v2652_v21 = vpop.eup %2651 }
0x1577   :  { %v1067_v22 = vadd.f32 1.0, %v2652_v21 }
0x1579   :  { %1073 = vrot.lane.b32.xlu0 %v2650_v19, %s2863_s27  ;;  %2653 = vrcp.f32 %v1067_v22  ;;  %v1223_v19 = vadd.f32 %v3125_v36, %v3169_v8 }
0x1583   :  { %v2654_v25 = vpop.eup %2653 }
0x1584   :  { %v1071_v29 = vmul.f32 %v2654_v25, %v3135_v48 }
0x15e7   :  { %v1347_v23 = vpop.permute.xlu0 %1346 }
0x15e8   :  { %v1349_v24 = vmul.f32 %v2646_v11, %v1347_v23 }
0x15ea   :  { %1351 = vrot.lane.b32.xlu1 %v1349_v24, %s2864_s3 }
0x15eb   :  { %v1074_v26 = vpop.permute.xlu0 %1073 }
0x15ec   :  { %v1076_v27 = vmul.f32 %v2654_v25, %v1074_v26 }
0x15ee   :  { %1078 = vrot.lane.b32.xlu0 %v1076_v27, %s2864_s3 }
0x165c   :  { %v1352_v28 = vpop.permute.xlu1 %1351 }
0x165d   :  { %1354 = vst.msk [vmem:[#allocation13] sm:$0xff] %vm255_vm2, %v1352_v28  ;;  %2396 = vmatmul.mubr.msk.f32.vlgmr.msra.gmra.mrb[12].mxu1 %vm255_vm2, %v1352_v28 }
0x165e   :  { %2544 = vmatpush3.bf16.msra.mxu1 %v3139_v52  ;;  %2417 = vmatprep.mubr.msk.f32.mxu1 %vm2861_vm0, %v2862_v1 }
0x165f   :  { %2545 = vmatprep.subr.bf16.mxu1 %v2860_v0 }
0x1660   :  { %v1079_v30 = vpop.permute.xlu0 %1078 }
0x1661   :  { %v1081_v31 = vadd.f32 %v1079_v30, %v1071_v29 }
0x1662   :  { %2547 = vmatpush3.bf16.msra.mxu1 %v3143_v55 }
0x1663   :  { %2655 = vtanh.f32 %v1081_v31  ;;  %2554 = vmatprep.subr.bf16.mxu1 %v2860_v0 }
0x166d   :  { %v2656_v32 = vpop.eup %2655 }
0x166e   :  { %1084 = vrot.lane.b32.xlu0 %v2656_v32, %s2863_s27 }
0x16e0   :  { %v1085_v33 = vpop.permute.xlu0 %1084 }
0x16e1   :  { %v1087_v35 = vmul.f32 %v2654_v25, %v1085_v33 }
0x16e3   :  { %1089 = vrot.lane.b32.xlu0 %v1087_v35, %s2864_s3 }
0x1730   :  { %v1424_v41 = vpop.f32.mrb[12].mxu1 }
0x1731   :  { %v1428_v62 = vadd.f32 %v1424_v41, %v1213_v37  ;;  %v2397_v42 = vpop.f32.mrb[13].mxu1  ;;  %v1228_v41 = vadd.f32 %v3169_v8, %v3132_v40 }
0x1733   :  { %2657 = vtanh.f32 %v1428_v62  ;;  %v2137_v46 = vmul.f32 -1.442695, %v1428_v62 }
0x1735   :  { %2659 = vpow2.f32 %v2137_v46 }
0x173d   :  { %v2658_v43 = vpop.eup %2657 }
0x173e   :  { %1438 = vrot.lane.b32.xlu1 %v2658_v43, %s2863_s27 }
0x173f   :  { %v2660_v47 = vpop.eup %2659 }
0x1740   :  { %v1432_v34 = vadd.f32 1.0, %v2660_v47 }
0x1742   :  { %2661 = vrcp.f32 %v1432_v34 }
0x174c   :  { %v2662_v48 = vpop.eup %2661 }
0x174d   :  { %v1436_v51 = vmul.f32 %v2662_v48, %v1343_v17 }
0x1755   :  { %v1090_v44 = vpop.permute.xlu0 %1089 }
0x1756   :  { %1093 = vst.msk [vmem:[#allocation2 + $0x38] sm:$0xff] %vm255_vm2, %v1090_v44 }
0x175d   :  { %v1101_v45 = vld [vmem:[#allocation2 + $0x38] sm:$0xff] }
0x175e   :  { %2374 = vmatmul.mubr.msk.f32.gmra.mrb[20].mxu0 %vm255_vm2, %v1101_v45 }
0x175f   :  { %2406 = vmatprep.mubr.msk.f32.mxu0 %vm2861_vm0, %v2862_v1 }
0x17b0   :  { %v1439_v49 = vpop.permute.xlu1 %1438 }
0x17b1   :  { %v1441_v50 = vmul.f32 %v2662_v48, %v1439_v49 }
0x17b3   :  { %1443 = vrot.lane.b32.xlu1 %v1441_v50, %s2864_s3 }
0x1825   :  { %v1444_v53 = vpop.permute.xlu1 %1443 }
0x1826   :  { %v1446_v54 = vadd.f32 %v1444_v53, %v1436_v51 }
0x1828   :  { %2663 = vtanh.f32 %v1446_v54 }
0x1831   :  { %v3197_v56 = vpop.f32.mrb[20].mxu0 }
0x1832   :  { %v2664_v57 = vpop.eup %2663  ;;  %v3199_v58 = vpop.f32.mrb[21].mxu0 }
0x1833   :  { %1449 = vrot.lane.b32.xlu1 %v2664_v57, %s2863_s27 }
0x18a5   :  { %v1450_v60 = vpop.permute.xlu1 %1449 }
0x18a6   :  { %v1452_v63 = vmul.f32 %v2662_v48, %v1450_v60 }
0x18a8   :  { %1454 = vrot.lane.b32.xlu1 %v1452_v63, %s2864_s3  ;;  %v1233_v63 = vadd.f32 %v3130_v39, %v3169_v8 }
0x191a   :  { %v1455_v2 = vpop.permute.xlu1 %1454 }
0x191b   :  { %1458 = vst.msk [vmem:[#allocation13 + $0x8] sm:$0xff] %vm255_vm2, %v1455_v2  ;;  %2407 = vmatmul.mubr.msk.f32.vlgmr.msra.gmra.mrb[22].mxu0 %vm255_vm2, %v1455_v2 }
0x191c   :  { %2550 = vmatpush3.bf16.msra.mxu0 %v3139_v52  ;;  %2428 = vmatprep.mubr.msk.f32.mxu0 %vm2861_vm0, %v2862_v1 }
0x191d   :  { %2551 = vmatprep.subr.bf16.mxu0 %v2860_v0 }
0x1920   :  { %2553 = vmatpush3.bf16.msra.mxu0 %v3143_v55 }
0x1921   :  { %2560 = vmatprep.subr.bf16.mxu0 %v2860_v0 }
0x19ee   :  { %v1528_v4 = vpop.f32.mrb[22].mxu0 }
0x19ef   :  { %v1532_v5 = vadd.f32 %v1528_v4, %v1218_v3  ;;  %v2408_v6 = vpop.f32.mrb[23].mxu0 }
0x19f1   :  { %2665 = vtanh.f32 %v1532_v5  ;;  %v2139_v9 = vmul.f32 -1.442695, %v1532_v5 }
0x19f3   :  { %2667 = vpow2.f32 %v2139_v9 }
0x19fb   :  { %v2666_v7 = vpop.eup %2665 }
0x19fc   :  { %1542 = vrot.lane.b32.xlu0 %v2666_v7, %s2863_s27 }
0x19fd   :  { %v2668_v12 = vpop.eup %2667 }
0x19fe   :  { %v1536_v10 = vadd.f32 1.0, %v2668_v12 }
0x1a00   :  { %2669 = vrcp.f32 %v1536_v10 }
0x1a0a   :  { %v2670_v13 = vpop.eup %2669 }
0x1a0b   :  { %v1540_v59 = vmul.f32 %v2670_v13, %v1446_v54 }
0x1a6e   :  { %v1543_v61 = vpop.permute.xlu0 %1542 }
0x1a6f   :  { %v1545_v11 = vmul.f32 %v2670_v13, %v1543_v61 }
0x1a71   :  { %1547 = vrot.lane.b32.xlu1 %v1545_v11, %s2864_s3 }
0x1ae3   :  { %v1548_v14 = vpop.permute.xlu1 %1547 }
0x1ae4   :  { %v1550_v38 = vadd.f32 %v1548_v14, %v1540_v59  ;;  %v1238_v59 = vadd.f32 %v3169_v8, %v3199_v58 }
0x1ae6   :  { %2671 = vtanh.f32 %v1550_v38 }
0x1af0   :  { %v2672_v15 = vpop.eup %2671 }
0x1af1   :  { %1553 = vrot.lane.b32.xlu0 %v2672_v15, %s2863_s27 }
0x1b63   :  { %v1554_v16 = vpop.permute.xlu0 %1553 }
0x1b64   :  { %v1556_v17 = vmul.f32 %v2670_v13, %v1554_v16 }
0x1b66   :  { %1558 = vrot.lane.b32.xlu1 %v1556_v17, %s2864_s3 }
0x1bd8   :  { %v1559_v18 = vpop.permute.xlu1 %1558 }
0x1bd9   :  { %1562 = vst.msk [vmem:[#allocation13 + $0x10] sm:$0xff] %vm255_vm2, %v1559_v18  ;;  %2418 = vmatmul.mubr.msk.f32.vlgmr.msra.gmra.mrb[14].mxu1 %vm255_vm2, %v1559_v18 }
0x1bda   :  { %2556 = vmatpush3.bf16.msra.mxu1 %v3139_v52  ;;  %2439 = vmatprep.mubr.msk.f32.mxu1 %vm2861_vm0, %v2862_v1 }
0x1bdb   :  { %2557 = vmatprep.subr.bf16.mxu1 %v2860_v0 }
0x1bde   :  { %2559 = vmatpush3.bf16.msra.mxu1 %v3143_v55 }
0x1bdf   :  { %2566 = vmatprep.subr.bf16.mxu1 %v2860_v0 }
0x1cac   :  { %v1632_v20 = vpop.f32.mrb[14].mxu1 }
0x1cad   :  { %v1636_v21 = vadd.f32 %v1632_v20, %v1223_v19  ;;  %v2419_v22 = vpop.f32.mrb[15].mxu1 }
0x1caf   :  { %2673 = vtanh.f32 %v1636_v21  ;;  %v2141_v24 = vmul.f32 -1.442695, %v1636_v21 }
0x1cb1   :  { %2675 = vpow2.f32 %v2141_v24 }
0x1cb9   :  { %v2674_v23 = vpop.eup %2673 }
0x1cba   :  { %1646 = vrot.lane.b32.xlu0 %v2674_v23, %s2863_s27 }
0x1cbb   :  { %v2676_v25 = vpop.eup %2675 }
0x1cbc   :  { %v1640_v26 = vadd.f32 1.0, %v2676_v25 }
0x1cbe   :  { %2677 = vrcp.f32 %v1640_v26 }
0x1cc8   :  { %v2678_v27 = vpop.eup %2677 }
0x1cc9   :  { %v1644_v30 = vmul.f32 %v2678_v27, %v1550_v38 }
0x1d2c   :  { %v1647_v28 = vpop.permute.xlu0 %1646 }
0x1d2d   :  { %v1649_v29 = vmul.f32 %v2678_v27, %v1647_v28 }
0x1d2f   :  { %1651 = vrot.lane.b32.xlu1 %v1649_v29, %s2864_s3  ;;  %v1243_v29 = vadd.f32 %v3197_v56, %v3169_v8 }
0x1da1   :  { %v1652_v31 = vpop.permute.xlu1 %1651 }
0x1da2   :  { %v1654_v36 = vadd.f32 %v1652_v31, %v1644_v30 }
0x1da4   :  { %2679 = vtanh.f32 %v1654_v36 }
0x1dae   :  { %v2680_v32 = vpop.eup %2679 }
0x1daf   :  { %1657 = vrot.lane.b32.xlu0 %v2680_v32, %s2863_s27 }
0x1e21   :  { %v1658_v33 = vpop.permute.xlu0 %1657 }
0x1e22   :  { %v1660_v35 = vmul.f32 %v2678_v27, %v1658_v33 }
0x1e24   :  { %1662 = vrot.lane.b32.xlu1 %v1660_v35, %s2864_s3 }
0x1e96   :  { %v1663_v37 = vpop.permute.xlu1 %1662 }
0x1e97   :  { %1666 = vst.msk [vmem:[#allocation13 + $0x18] sm:$0xff] %vm255_vm2, %v1663_v37  ;;  %2429 = vmatmul.mubr.msk.f32.vlgmr.msra.gmra.mrb[24].mxu0 %vm255_vm2, %v1663_v37 }
0x1e98   :  { %2562 = vmatpush3.bf16.msra.mxu0 %v3139_v52  ;;  %2450 = vmatprep.mubr.msk.f32.mxu0 %vm2861_vm0, %v2862_v1 }
0x1e99   :  { %2563 = vmatprep.subr.bf16.mxu0 %v2860_v0 }
0x1e9c   :  { %2565 = vmatpush3.bf16.msra.mxu0 %v3143_v55 }
0x1f6a   :  { %v1736_v62 = vpop.f32.mrb[24].mxu0 }
0x1f6b   :  { %v1740_v42 = vadd.f32 %v1736_v62, %v1228_v41  ;;  %v2430_v43 = vpop.f32.mrb[25].mxu0 }
0x1f6d   :  { %2681 = vtanh.f32 %v1740_v42  ;;  %v2143_v45 = vmul.f32 -1.442695, %v1740_v42 }
0x1f6f   :  { %2683 = vpow2.f32 %v2143_v45 }
0x1f77   :  { %v2682_v44 = vpop.eup %2681 }
0x1f78   :  { %1750 = vrot.lane.b32.xlu0 %v2682_v44, %s2863_s27 }
0x1f79   :  { %v2684_v46 = vpop.eup %2683 }
0x1f7a   :  { %v1744_v47 = vadd.f32 1.0, %v2684_v46 }
0x1f7c   :  { %2685 = vrcp.f32 %v1744_v47 }
0x1f86   :  { %v2686_v34 = vpop.eup %2685 }
0x1f87   :  { %v1748_v50 = vmul.f32 %v2686_v34, %v1654_v36 }
0x1fea   :  { %v1751_v48 = vpop.permute.xlu0 %1750 }
0x1feb   :  { %v1753_v49 = vmul.f32 %v2686_v34, %v1751_v48 }
0x1fed   :  { %1755 = vrot.lane.b32.xlu1 %v1753_v49, %s2864_s3 }
0x205f   :  { %v1756_v51 = vpop.permute.xlu1 %1755 }
0x2060   :  { %v1758_v40 = vadd.f32 %v1756_v51, %v1748_v50 }
0x2062   :  { %2687 = vtanh.f32 %v1758_v40 }
0x206c   :  { %v2688_v53 = vpop.eup %2687 }
0x206d   :  { %1761 = vrot.lane.b32.xlu0 %v2688_v53, %s2863_s27 }
0x20df   :  { %v1762_v54 = vpop.permute.xlu0 %1761 }
0x20e0   :  { %v1764_v57 = vmul.f32 %v2686_v34, %v1762_v54 }
0x20e2   :  { %1766 = vrot.lane.b32.xlu1 %v1764_v57, %s2864_s3 }
0x2154   :  { %v1767_v60 = vpop.permute.xlu1 %1766 }
0x2155   :  { %1770 = vst.msk [vmem:[#allocation13 + $0x20] sm:$0xff] %vm255_vm2, %v1767_v60  ;;  %2440 = vmatmul.mubr.msk.f32.vlgmr.msra.gmra.mrb[16].mxu1 %vm255_vm2, %v1767_v60 }
0x2156   :  { %2568 = vmatpush3.bf16.msra.mxu1 %v3139_v52  ;;  %2461 = vmatprep.mubr.msk.f32.mxu1 %vm2861_vm0, %v2862_v1 }
0x2157   :  { %2569 = vmatprep.subr.bf16.mxu1 %v2860_v0 }
0x215a   :  { %2571 = vmatpush3.bf16.msra.mxu1 %v3143_v55 }
0x2228   :  { %v1840_v2 = vpop.f32.mrb[16].mxu1 }
0x2229   :  { %v1844_v3 = vadd.f32 %v1840_v2, %v1233_v63  ;;  %v2441_v4 = vpop.f32.mrb[17].mxu1 }
0x222b   :  { %2689 = vtanh.f32 %v1844_v3  ;;  %v2145_v6 = vmul.f32 -1.442695, %v1844_v3 }
0x222d   :  { %2691 = vpow2.f32 %v2145_v6 }
0x2235   :  { %v2690_v5 = vpop.eup %2689 }
0x2236   :  { %1854 = vrot.lane.b32.xlu0 %v2690_v5, %s2863_s27 }
0x2237   :  { %v2692_v52 = vpop.eup %2691 }
0x2238   :  { %v1848_v7 = vadd.f32 1.0, %v2692_v52 }
0x223a   :  { %2693 = vrcp.f32 %v1848_v7 }
0x2244   :  { %v2694_v1 = vpop.eup %2693 }
0x2245   :  { %v1852_v55 = vmul.f32 %v2694_v1, %v1758_v40 }
0x22a8   :  { %v1855_v9 = vpop.permute.xlu0 %1854 }
0x22a9   :  { %v1857_v0 = vmul.f32 %v2694_v1, %v1855_v9 }
0x22ab   :  { %1859 = vrot.lane.b32.xlu1 %v1857_v0, %s2864_s3 }
0x231d   :  { %v1860_v12 = vpop.permute.xlu1 %1859 }
0x231e   :  { %v1862_v39 = vadd.f32 %v1860_v12, %v1852_v55 }
0x2320   :  { %2695 = vtanh.f32 %v1862_v39 }
0x232a   :  { %v2696_v10 = vpop.eup %2695 }
0x232b   :  { %1865 = vrot.lane.b32.xlu0 %v2696_v10, %s2863_s27 }
0x239d   :  { %v1866_v13 = vpop.permute.xlu0 %1865 }
0x239e   :  { %v1868_v61 = vmul.f32 %v2694_v1, %v1866_v13 }
0x23a0   :  { %1870 = vrot.lane.b32.xlu1 %v1868_v61, %s2864_s3 }
0x2412   :  { %v1871_v11 = vpop.permute.xlu1 %1870 }
0x2413   :  { %1874 = vst.msk [vmem:[#allocation13 + $0x28] sm:$0xff] %vm255_vm2, %v1871_v11  ;;  %2451 = vmatmul.mubr.msk.f32.vlgmr.msra.gmra.mrb[26].mxu0 %vm255_vm2, %v1871_v11 }
0x24e6   :  { %v1944_v14 = vpop.f32.mrb[26].mxu0 }
0x24e7   :  { %v1948_v38 = vadd.f32 %v1944_v14, %v1238_v59  ;;  %v2452_v15 = vpop.f32.mrb[27].mxu0 }
0x24e9   :  { %2697 = vtanh.f32 %v1948_v38  ;;  %v2147_v17 = vmul.f32 -1.442695, %v1948_v38 }
0x24eb   :  { %2699 = vpow2.f32 %v2147_v17 }
0x24f3   :  { %v2698_v16 = vpop.eup %2697 }
0x24f4   :  { %1958 = vrot.lane.b32.xlu0 %v2698_v16, %s2863_s27 }
0x24f5   :  { %v2700_v18 = vpop.eup %2699 }
0x24f6   :  { %v1952_v19 = vadd.f32 1.0, %v2700_v18 }
0x24f8   :  { %2701 = vrcp.f32 %v1952_v19 }
0x2502   :  { %v2702_v20 = vpop.eup %2701 }
0x2503   :  { %v1956_v23 = vmul.f32 %v2702_v20, %v1862_v39 }
0x2566   :  { %v1959_v21 = vpop.permute.xlu0 %1958 }
0x2567   :  { %v1961_v22 = vmul.f32 %v2702_v20, %v1959_v21 }
0x2569   :  { %1963 = vrot.lane.b32.xlu1 %v1961_v22, %s2864_s3 }
0x25db   :  { %v1964_v24 = vpop.permute.xlu1 %1963 }
0x25dc   :  { %v1966_v58 = vadd.f32 %v1964_v24, %v1956_v23 }
0x25de   :  { %2703 = vtanh.f32 %v1966_v58 }
0x25e8   :  { %v2704_v25 = vpop.eup %2703 }
0x25e9   :  { %1969 = vrot.lane.b32.xlu0 %v2704_v25, %s2863_s27 }
0x265b   :  { %v1970_v26 = vpop.permute.xlu0 %1969 }
0x265c   :  { %v1972_v27 = vmul.f32 %v2702_v20, %v1970_v26 }
0x265e   :  { %1974 = vrot.lane.b32.xlu1 %v1972_v27, %s2864_s3 }
0x26d0   :  { %v1975_v28 = vpop.permute.xlu1 %1974 }
0x26d1   :  { %1978 = vst.msk [vmem:[#allocation13 + $0x30] sm:$0xff] %vm255_vm2, %v1975_v28  ;;  %2462 = vmatmul.mubr.msk.f32.vlgmr.msra.gmra.mrb[18].mxu1 %vm255_vm2, %v1975_v28 }
0x27a4   :  { %v2048_v30 = vpop.f32.mrb[18].mxu1 }
0x27a5   :  { %v2052_v31 = vadd.f32 %v2048_v30, %v1243_v29  ;;  %v2463_v36 = vpop.f32.mrb[19].mxu1 }
0x27a7   :  { %2705 = vtanh.f32 %v2052_v31  ;;  %v2149_v33 = vmul.f32 -1.442695, %v2052_v31 }
0x27a9   :  { %2707 = vpow2.f32 %v2149_v33 }
0x27b1   :  { %v2706_v32 = vpop.eup %2705 }
0x27b2   :  { %2062 = vrot.lane.b32.xlu0 %v2706_v32, %s2863_s27 }
0x27b3   :  { %v2708_v35 = vpop.eup %2707 }
0x27b4   :  { %v2056_v37 = vadd.f32 1.0, %v2708_v35 }
0x27b6   :  { %2709 = vrcp.f32 %v2056_v37 }
0x27c0   :  { %v2710_v41 = vpop.eup %2709 }
0x27c1   :  { %v2060_v43 = vmul.f32 %v2710_v41, %v1966_v58 }
0x2824   :  { %v2063_v62 = vpop.permute.xlu0 %2062 }
0x2825   :  { %v2065_v42 = vmul.f32 %v2710_v41, %v2063_v62 }
0x2827   :  { %2067 = vrot.lane.b32.xlu1 %v2065_v42, %s2864_s3 }
0x2899   :  { %v2068_v44 = vpop.permute.xlu1 %2067 }
0x289a   :  { %v2070_v8 = vadd.f32 %v2068_v44, %v2060_v43 }
0x289c   :  { %2711 = vtanh.f32 %v2070_v8 }
0x28a6   :  { %v2712_v56 = vpop.eup %2711 }
0x28a7   :  { %2073 = vrot.lane.b32.xlu0 %v2712_v56, %s2863_s27 }
0x2919   :  { %v2074_v45 = vpop.permute.xlu0 %2073 }
0x291a   :  { %v2076_v46 = vmul.f32 %v2710_v41, %v2074_v45 }
0x291c   :  { %2078 = vrot.lane.b32.xlu1 %v2076_v46, %s2864_s3 }
0x298e   :  { %v2079_v47 = vpop.permute.xlu1 %2078 }
0x298f   :  { %2082 = vst.msk [vmem:[#allocation13 + $0x38] sm:$0xff] %vm255_vm2, %v2079_v47 }
0x2990   :  { %2834 = shalt.err (!%p2831_p2)
}
0x2991   :  { %s2835_s23 = scalar_lea.hbm %s3296_s7, 1024 }
0x2992   :  { %p2836_p3 = scmp.ne.s32.totalorder %s3296_s7, %s2835_s23  ;;  %p2839_p4 = scmp.lt.u32.totalorder %s2835_s23, %s3296_s7 }
0x2994   :  { %p2841_p5 = pnand %p2839_p4, %p2836_p3 }
0x2996   :  { %2844 = shalt.err (!%p2841_p5)
}
0x2997   :  { %2094 = dma.vmem_to_hbm [thread:$0]  %s2089_s19, 1024, %s3296_s7, [#allocation6], %s2855_s13, %s2855_s13, %s2856_s14  }
0x2998   :  { %2851 = dma.done.wait [#allocation6], 1024  }
0x2999   :  { %2852 = vsyncadd [#allocation6], 4294966272 }
0x299a   :  { %2098 = vsyncpa [#allocation5], 1 }
0x299b   :  { %2099 = vsyncpa [#allocation8], 1 }
0x299c   :  { %2100 = vsyncpa [#allocation11], 1 }
0x299d   :  { %2101 = vsyncpa [#allocation6], 1 }

</bundles_post_ra>
